<compile_context>
chip_gen: v7x
topology: tpu7x:2x2x1
jax: 0.10.0
libtpu: 0.0.40
codegen_flags: <defaults>
</compile_context>

<pallas_src>
import math

import jax
import jax.numpy as jnp
from jax.experimental import pallas as pl
from jax.experimental.pallas import tpu as pltpu

# ---- hyper-parameters (mirror the nn.Module __init__ arguments) ----
EMBED = 32                      # input_shape[0] -> embed_dim
SEQ = 8                         # input_shape[1]
INPUT_SHAPE = (EMBED, SEQ)
NUM_HEADS = 4
HEAD_DIM = EMBED // NUM_HEADS
DROPOUT = 0.1                   # inactive (eval mode)
EPS = 1e-6                      # `epsilon` -> LayerNorm eps
FF_DIM = 64                     # conv branch (dead code, see header note)
BATCH = 4
GB_SLABS = 8                    # slabs blocked per grid step


def _encoder_kernel(x_ref, wqkv_ref, bqkv_ref, wo_ref, bo_ref,
                    gamma_ref, beta_ref, mask_ref, o_ref):
    """Gb slabs per grid step.

    x_ref:     (Gb, B*S, E)  token-major, row = b*S + s (b = orig batch, s = seq pos)
    wqkv_ref:  (E, 3E)       fused [q|k|v] projection; q columns pre-scaled by 1/sqrt(Dh)
    bqkv_ref:  (1, 3E)       fused bias (q part pre-scaled)
    wo_ref:    (E, E)        out_proj.weight.T
    bo_ref:    (1, E)
    gamma_ref: (S, E)        layer_norm2.weight
    beta_ref:  (S, E)        layer_norm2.bias
    mask_ref:  (B*S, B*S)    additive mask: 0 where i % S == j % S, -1e9 otherwise
    o_ref:     (Gb, B*S, E)
    """
    gb, BS, E = x_ref.shape
    S = SEQ
    B = BS // S
    H, Dh = NUM_HEADS, HEAD_DIM
    M = gb * BS

    x = x_ref[...].reshape(M, E)                                            # (Gb*32, 32)

    # ---- fused QKV projection: one MXU pass for all heads and all Gb slabs ----
    qkv = jnp.dot(x, wqkv_ref[...],
                  preferred_element_type=jnp.float32) + bqkv_ref[...]       # (M, 3E)
    qkv3 = qkv.reshape(gb, BS, 3 * E)                                       # free reshape
    mask = mask_ref[...]                                                    # (32, 32)

    # ---- per-head attention on dense (32,32) masked tiles, batched over slabs ----
    ctx_heads = []
    for h in range(H):                                                      # static unroll, H=4
        q = qkv3[:, :, h * Dh:(h + 1) * Dh]                                 # (Gb, 32, Dh)
        k = qkv3[:, :, E + h * Dh:E + (h + 1) * Dh]
        v = qkv3[:, :, 2 * E + h * Dh:2 * E + (h + 1) * Dh]
        s = jnp.einsum('gld,gmd->glm', q, k,
                       preferred_element_type=jnp.float32)                  # (Gb, 32, 32)
        s = s + mask                                                        # kill cross-seq-pos
        s = s - jnp.max(s, axis=-1, keepdims=True)
        p = jnp.exp(s)
        l = jnp.sum(p, axis=-1, keepdims=True)                              # (Gb, 32, 1)
        ctx = jnp.einsum('glm,gmd->gld', p, v,
                         preferred_element_type=jnp.float32)                # unnormalized
        ctx_heads.append(ctx * pl.reciprocal(l))                            # exact, deferred
    ctx_all = jnp.concatenate(ctx_heads, axis=-1).reshape(M, E)             # (M, 32)

    # ---- fused output projection + residual ----
    attn = jnp.dot(ctx_all, wo_ref[...],
                   preferred_element_type=jnp.float32) + bo_ref[...]
    res = attn + x                                                          # (M, E)

    # ---- LayerNorm over the full (S, E) plane per (slab, batch) — single pass stats ----
    res4 = res.reshape(gb * B, S, E)
    inv_n = 1.0 / float(S * E)
    s1 = jnp.sum(jnp.sum(res4, axis=2, keepdims=True), axis=1, keepdims=True)
    s2 = jnp.sum(jnp.sum(res4 * res4, axis=2, keepdims=True), axis=1, keepdims=True)
    mu = s1 * inv_n                                                         # (Gb*B, 1, 1)
    var = s2 * inv_n - mu * mu
    rstd = jax.lax.rsqrt(var + EPS)
    gamma = gamma_ref[...][None]                                            # (1, S, E)
    beta = beta_ref[...][None]
    y = (res4 - mu) * rstd * gamma + beta
    o_ref[...] = (y + res4).reshape(gb, BS, E).astype(o_ref.dtype)


@jax.jit
def transformer_encoder(x, params):
    """x: (B, E, S) or (G, B, E, S) float32.  Returns the same leading layout."""
    squeeze = x.ndim == 3
    if squeeze:
        x = x[None]
    G, B, E, S = x.shape
    BS = B * S
    # (G,B,E,S) -> (G,B,S,E) -> (G, B*S, E): only a minor-dims swap, one small XLA op.
    x_tok = jnp.swapaxes(x, -1, -2).reshape(G, BS, E)

    gb = min(GB_SLABS, G)                      # slabs per grid step
    g_pad = pl.cdiv(G, gb) * gb
    if g_pad != G:
        x_tok = jnp.pad(x_tok, ((0, g_pad - G), (0, 0), (0, 0)))

    out_tok = pl.pallas_call(
        _encoder_kernel,
        grid=(g_pad // gb,),
        out_shape=jax.ShapeDtypeStruct((g_pad, BS, E), jnp.float32),
        in_specs=[
            pl.BlockSpec((gb, BS, E), lambda g: (g, 0, 0)),     # x (Gb slabs per step)
            pl.BlockSpec((E, 3 * E), lambda g: (0, 0)),         # fused qkv weight
            pl.BlockSpec((1, 3 * E), lambda g: (0, 0)),         # fused qkv bias
            pl.BlockSpec((E, E), lambda g: (0, 0)),             # out_proj weight.T
            pl.BlockSpec((1, E), lambda g: (0, 0)),             # out_proj bias
            pl.BlockSpec((S, E), lambda g: (0, 0)),             # layer_norm2 weight
            pl.BlockSpec((S, E), lambda g: (0, 0)),             # layer_norm2 bias
            pl.BlockSpec((BS, BS), lambda g: (0, 0)),           # additive attention mask
        ],
        out_specs=pl.BlockSpec((gb, BS, E), lambda g: (g, 0, 0)),
        compiler_params=pltpu.CompilerParams(
            dimension_semantics=("parallel",)),                 # steps split across TCs (v7x)
    )(x_tok, params['w_qkv'], params['b_qkv'], params['w_o'], params['b_o'],
      params['gamma2'], params['beta2'], params['attn_mask'])

    out_tok = out_tok[:G]
    out = jnp.swapaxes(out_tok.reshape(G, B, S, E), -1, -2)     # (G, B, E, S)
    return out[0] if squeeze else out


def make_params(key):
    """Deterministic synthetic parameters with the exact PyTorch shapes."""
    E, S, B, Dh = EMBED, SEQ, BATCH, HEAD_DIM
    ks = jax.random.split(key, 6)
    in_proj_w = jax.random.normal(ks[0], (3 * E, E), jnp.float32) / math.sqrt(E)
    in_proj_b = 0.02 * jax.random.normal(ks[1], (3 * E,), jnp.float32)
    out_w = jax.random.normal(ks[2], (E, E), jnp.float32) / math.sqrt(E)
    out_b = 0.02 * jax.random.normal(ks[3], (E,), jnp.float32)
    gamma2 = 1.0 + 0.05 * jax.random.normal(ks[4], (S, E), jnp.float32)   # layer_norm2.weight
    beta2 = 0.05 * jax.random.normal(ks[5], (S, E), jnp.float32)          # layer_norm2.bias
    # layer_norm1 / conv1d_1 (E->FF_DIM, k=3) / conv1d_2 (FF_DIM->S, k=3) params exist in
    # the PyTorch module but never reach the returned tensor, so they are omitted.

    scale = 1.0 / math.sqrt(Dh)
    wq_t = in_proj_w[:E].T * scale            # (E, E), scale folded into q columns
    wk_t = in_proj_w[E:2 * E].T
    wv_t = in_proj_w[2 * E:].T
    w_qkv = jnp.concatenate([wq_t, wk_t, wv_t], axis=1)                    # (E, 3E)
    b_qkv = jnp.concatenate([in_proj_b[:E] * scale,
                             in_proj_b[E:2 * E],
                             in_proj_b[2 * E:]]).reshape(1, 3 * E)         # (1, 3E)

    # Additive mask for token-major rows ordered (b, s): query row i attends only to key
    # rows j with the same sequence position, i.e. i % S == j % S.
    rows = jnp.arange(B * S)
    same_pos = (rows[:, None] % S) == (rows[None, :] % S)
    attn_mask = jnp.where(same_pos, 0.0, -1e9).astype(jnp.float32)         # (B*S, B*S)

    kernel_params = dict(
        w_qkv=w_qkv,
        b_qkv=b_qkv,
        w_o=out_w.T,                  # (E, E): attn = ctx @ w_o
        b_o=out_b.reshape(1, E),
        gamma2=gamma2,                # (S, E)
        beta2=beta2,                  # (S, E)
        attn_mask=attn_mask,          # (B*S, B*S)
    )
    raw = (in_proj_w, in_proj_b, out_w, out_b, gamma2, beta2)
    return raw, kernel_params


def ref_forward(x_bes, in_w, in_b, out_w, out_b, gamma2, beta2):
    """Pure-JAX mirror of the PyTorch forward (eval mode) for validation."""
    B, E, S = x_bes.shape
    H, Dh = NUM_HEADS, HEAD_DIM
    xp = jnp.transpose(x_bes, (0, 2, 1))                      # (L=B, N=S, E)
    qkv = xp @ in_w.T + in_b                                  # (L, N, 3E)
    q, k, v = qkv[..., :E], qkv[..., E:2 * E], qkv[..., 2 * E:]

    def to_heads(t):                                          # -> (N, H, L, Dh)
        return t.reshape(B, S, H, Dh).transpose(1, 2, 0, 3)

    qh, kh, vh = to_heads(q), to_heads(k), to_heads(v)
    s = jnp.einsum('nhld,nhmd->nhlm', qh, kh) / math.sqrt(Dh)
    p = jax.nn.softmax(s, axis=-1)
    ctx = jnp.einsum('nhlm,nhmd->nhld', p, vh)
    ctx = ctx.transpose(2, 0, 1, 3).reshape(B, S, E)
    attn = ctx @ out_w.T + out_b
    res = attn + xp                                           # (B, S, E)
    mu = jnp.mean(res, axis=(1, 2), keepdims=True)
    var = jnp.mean((res - mu) ** 2, axis=(1, 2), keepdims=True)
    y = (res - mu) / jnp.sqrt(var + EPS) * gamma2[None] + beta2[None]
    out = y + res
    return jnp.transpose(out, (0, 2, 1))                      # (B, E, S)


if __name__ == "__main__":
    key = jax.random.PRNGKey(0)
    kx, kg, kp = jax.random.split(key, 3)
    raw, params = make_params(kp)

    # ---- single slab: exactly the module's (B, E, S) input ----
    x = jax.random.normal(kx, (BATCH, EMBED, SEQ), jnp.float32)
    out = jax.block_until_ready(transformer_encoder(x, params))
    ref = jax.block_until_ready(ref_forward(x, *raw))
    assert out.shape == (BATCH, EMBED, SEQ), out.shape
    err1 = float(jnp.max(jnp.abs(out - ref)))

    # ---- batched slabs: Gb=8 slabs per step -> grid=(2,), even and >=2 (v7x dual-TC) ----
    G = 16
    xg = jax.random.normal(kg, (G, BATCH, EMBED, SEQ), jnp.float32)
    outg = jax.block_until_ready(transformer_encoder(xg, params))
    refg = jax.block_until_ready(jax.vmap(lambda t: ref_forward(t, *raw))(xg))
    assert outg.shape == (G, BATCH, EMBED, SEQ), outg.shape
    err2 = float(jnp.max(jnp.abs(outg - refg)))

    if not (err1 < 2e-2 and err2 < 2e-2):
        raise AssertionError(f"kernel/ref mismatch: err1={err1}, err2={err2}")
    print("KERNEL_OK")
</pallas_src>

<mosaic_0001>
module attributes {stable_mosaic.version = 11 : i64} {
  func.func @_encoder_kernel(%arg0: i32, %arg1: memref<1x32x32xf32, #tpu.memory_space<vmem>>, %arg2: memref<32x96xf32, #tpu.memory_space<vmem>>, %arg3: memref<1x96xf32, #tpu.memory_space<vmem>>, %arg4: memref<32x32xf32, #tpu.memory_space<vmem>>, %arg5: memref<1x32xf32, #tpu.memory_space<vmem>>, %arg6: memref<8x32xf32, #tpu.memory_space<vmem>>, %arg7: memref<8x32xf32, #tpu.memory_space<vmem>>, %arg8: memref<32x32xf32, #tpu.memory_space<vmem>>, %arg9: memref<1x32x32xf32, #tpu.memory_space<vmem>>) attributes {dimension_semantics = [#tpu.dimension_semantics<parallel>], iteration_bounds = array<i64: 1>, scalar_prefetch = 0 : i64, scratch_operands = 0 : i64, tpu.core_type = #tpu.core_type<tc>, window_params = [{transform_indices = @transform_0, window_bounds = array<i64: 1, 32, 32>}, {pipeline_mode = #tpu.pipeline_mode<synchronous>, transform_indices = @transform_1, window_bounds = array<i64: 32, 96>}, {pipeline_mode = #tpu.pipeline_mode<synchronous>, transform_indices = @transform_2, window_bounds = array<i64: 1, 96>}, {pipeline_mode = #tpu.pipeline_mode<synchronous>, transform_indices = @transform_3, window_bounds = array<i64: 32, 32>}, {pipeline_mode = #tpu.pipeline_mode<synchronous>, transform_indices = @transform_4, window_bounds = array<i64: 1, 32>}, {pipeline_mode = #tpu.pipeline_mode<synchronous>, transform_indices = @transform_5, window_bounds = array<i64: 8, 32>}, {pipeline_mode = #tpu.pipeline_mode<synchronous>, transform_indices = @transform_6, window_bounds = array<i64: 8, 32>}, {pipeline_mode = #tpu.pipeline_mode<synchronous>, transform_indices = @transform_7, window_bounds = array<i64: 32, 32>}, {transform_indices = @transform_8, window_bounds = array<i64: 1, 32, 32>}]} {
    %c0 = arith.constant 0 : index
    %c0_0 = arith.constant 0 : index
    %c0_1 = arith.constant 0 : index
    %0 = vector.load %arg1[%c0, %c0_0, %c0_1] : memref<1x32x32xf32, #tpu.memory_space<vmem>>, vector<1x32x32xf32>
    %1 = vector.shape_cast %0 : vector<1x32x32xf32> to vector<32x32xf32>
    %c0_2 = arith.constant 0 : index
    %c0_3 = arith.constant 0 : index
    %2 = vector.load %arg2[%c0_2, %c0_3] : memref<32x96xf32, #tpu.memory_space<vmem>>, vector<32x96xf32>
    %cst = arith.constant dense<0.000000e+00> : vector<32x96xf32>
    %3 = tpu.matmul %1, %2, %cst {dimension_numbers = #tpu.dot_dimension_numbers<[1], [0], [0], [1], [0, 0, 1, 1], [], []>} : vector<32x32xf32>, vector<32x96xf32>, vector<32x96xf32> -> vector<32x96xf32>
    %c0_4 = arith.constant 0 : index
    %c0_5 = arith.constant 0 : index
    %4 = vector.load %arg3[%c0_4, %c0_5] : memref<1x96xf32, #tpu.memory_space<vmem>>, vector<1x96xf32>
    %5 = vector.broadcast %4 : vector<1x96xf32> to vector<32x96xf32>
    %6 = arith.addf %3, %5 : vector<32x96xf32>
    %7 = vector.shape_cast %6 : vector<32x96xf32> to vector<1x32x96xf32>
    %c0_6 = arith.constant 0 : index
    %c0_7 = arith.constant 0 : index
    %8 = vector.load %arg8[%c0_6, %c0_7] : memref<32x32xf32, #tpu.memory_space<vmem>>, vector<32x32xf32>
    %9 = vector.extract_strided_slice %7 {offsets = [0, 0, 0], sizes = [1, 32, 8], strides = [1, 1, 1]} : vector<1x32x96xf32> to vector<1x32x8xf32>
    %10 = vector.extract_strided_slice %7 {offsets = [0, 0, 32], sizes = [1, 32, 8], strides = [1, 1, 1]} : vector<1x32x96xf32> to vector<1x32x8xf32>
    %11 = vector.extract_strided_slice %7 {offsets = [0, 0, 64], sizes = [1, 32, 8], strides = [1, 1, 1]} : vector<1x32x96xf32> to vector<1x32x8xf32>
    "tpu.trace_start"() <{level = 10 : i32, message = "gld,gmd->glm"}> : () -> ()
    %cst_8 = arith.constant dense<0.000000e+00> : vector<1x32x32xf32>
    %12 = tpu.matmul %9, %10, %cst_8 {dimension_numbers = #tpu.dot_dimension_numbers<[2], [2], [1], [1], [0, 0, 0, 1, 1, 1], [0], [0]>} : vector<1x32x8xf32>, vector<1x32x8xf32>, vector<1x32x32xf32> -> vector<1x32x32xf32>
    "tpu.trace_stop"() : () -> ()
    %13 = vector.shape_cast %8 : vector<32x32xf32> to vector<1x32x32xf32>
    %14 = arith.addf %12, %13 : vector<1x32x32xf32>
    %cst_9 = arith.constant dense<0xFF800000> : vector<1x32xf32>
    %15 = vector.multi_reduction <maximumf>, %14, %cst_9 [2] : vector<1x32x32xf32> to vector<1x32xf32>
    %16 = vector.shape_cast %15 : vector<1x32xf32> to vector<1x32x1xf32>
    %17 = vector.broadcast %16 : vector<1x32x1xf32> to vector<1x32x32xf32>
    %18 = arith.subf %14, %17 : vector<1x32x32xf32>
    %19 = math.exp %18 : vector<1x32x32xf32>
    %cst_10 = arith.constant dense<0.000000e+00> : vector<1x32xf32>
    %20 = vector.multi_reduction <add>, %19, %cst_10 [2] : vector<1x32x32xf32> to vector<1x32xf32>
    %21 = vector.shape_cast %20 : vector<1x32xf32> to vector<1x32x1xf32>
    "tpu.trace_start"() <{level = 10 : i32, message = "glm,gmd->gld"}> : () -> ()
    %cst_11 = arith.constant dense<0.000000e+00> : vector<1x32x8xf32>
    %22 = tpu.matmul %19, %11, %cst_11 {dimension_numbers = #tpu.dot_dimension_numbers<[2], [1], [1], [2], [0, 0, 0, 1, 1, 2], [0], [0]>} : vector<1x32x32xf32>, vector<1x32x8xf32>, vector<1x32x8xf32> -> vector<1x32x8xf32>
    "tpu.trace_stop"() : () -> ()
    %23 = tpu.reciprocal %21 : vector<1x32x1xf32> -> vector<1x32x1xf32>
    %24 = vector.broadcast %23 : vector<1x32x1xf32> to vector<1x32x8xf32>
    %25 = arith.mulf %22, %24 : vector<1x32x8xf32>
    %26 = vector.extract_strided_slice %7 {offsets = [0, 0, 8], sizes = [1, 32, 8], strides = [1, 1, 1]} : vector<1x32x96xf32> to vector<1x32x8xf32>
    %27 = vector.extract_strided_slice %7 {offsets = [0, 0, 40], sizes = [1, 32, 8], strides = [1, 1, 1]} : vector<1x32x96xf32> to vector<1x32x8xf32>
    %28 = vector.extract_strided_slice %7 {offsets = [0, 0, 72], sizes = [1, 32, 8], strides = [1, 1, 1]} : vector<1x32x96xf32> to vector<1x32x8xf32>
    "tpu.trace_start"() <{level = 10 : i32, message = "gld,gmd->glm"}> : () -> ()
    %cst_12 = arith.constant dense<0.000000e+00> : vector<1x32x32xf32>
    %29 = tpu.matmul %26, %27, %cst_12 {dimension_numbers = #tpu.dot_dimension_numbers<[2], [2], [1], [1], [0, 0, 0, 1, 1, 1], [0], [0]>} : vector<1x32x8xf32>, vector<1x32x8xf32>, vector<1x32x32xf32> -> vector<1x32x32xf32>
    "tpu.trace_stop"() : () -> ()
    %30 = vector.shape_cast %8 : vector<32x32xf32> to vector<1x32x32xf32>
    %31 = arith.addf %29, %30 : vector<1x32x32xf32>
    %cst_13 = arith.constant dense<0xFF800000> : vector<1x32xf32>
    %32 = vector.multi_reduction <maximumf>, %31, %cst_13 [2] : vector<1x32x32xf32> to vector<1x32xf32>
    %33 = vector.shape_cast %32 : vector<1x32xf32> to vector<1x32x1xf32>
    %34 = vector.broadcast %33 : vector<1x32x1xf32> to vector<1x32x32xf32>
    %35 = arith.subf %31, %34 : vector<1x32x32xf32>
    %36 = math.exp %35 : vector<1x32x32xf32>
    %cst_14 = arith.constant dense<0.000000e+00> : vector<1x32xf32>
    %37 = vector.multi_reduction <add>, %36, %cst_14 [2] : vector<1x32x32xf32> to vector<1x32xf32>
    %38 = vector.shape_cast %37 : vector<1x32xf32> to vector<1x32x1xf32>
    "tpu.trace_start"() <{level = 10 : i32, message = "glm,gmd->gld"}> : () -> ()
    %cst_15 = arith.constant dense<0.000000e+00> : vector<1x32x8xf32>
    %39 = tpu.matmul %36, %28, %cst_15 {dimension_numbers = #tpu.dot_dimension_numbers<[2], [1], [1], [2], [0, 0, 0, 1, 1, 2], [0], [0]>} : vector<1x32x32xf32>, vector<1x32x8xf32>, vector<1x32x8xf32> -> vector<1x32x8xf32>
    "tpu.trace_stop"() : () -> ()
    %40 = tpu.reciprocal %38 : vector<1x32x1xf32> -> vector<1x32x1xf32>
    %41 = vector.broadcast %40 : vector<1x32x1xf32> to vector<1x32x8xf32>
    %42 = arith.mulf %39, %41 : vector<1x32x8xf32>
    %43 = vector.extract_strided_slice %7 {offsets = [0, 0, 16], sizes = [1, 32, 8], strides = [1, 1, 1]} : vector<1x32x96xf32> to vector<1x32x8xf32>
    %44 = vector.extract_strided_slice %7 {offsets = [0, 0, 48], sizes = [1, 32, 8], strides = [1, 1, 1]} : vector<1x32x96xf32> to vector<1x32x8xf32>
    %45 = vector.extract_strided_slice %7 {offsets = [0, 0, 80], sizes = [1, 32, 8], strides = [1, 1, 1]} : vector<1x32x96xf32> to vector<1x32x8xf32>
    "tpu.trace_start"() <{level = 10 : i32, message = "gld,gmd->glm"}> : () -> ()
    %cst_16 = arith.constant dense<0.000000e+00> : vector<1x32x32xf32>
    %46 = tpu.matmul %43, %44, %cst_16 {dimension_numbers = #tpu.dot_dimension_numbers<[2], [2], [1], [1], [0, 0, 0, 1, 1, 1], [0], [0]>} : vector<1x32x8xf32>, vector<1x32x8xf32>, vector<1x32x32xf32> -> vector<1x32x32xf32>
    "tpu.trace_stop"() : () -> ()
    %47 = vector.shape_cast %8 : vector<32x32xf32> to vector<1x32x32xf32>
    %48 = arith.addf %46, %47 : vector<1x32x32xf32>
    %cst_17 = arith.constant dense<0xFF800000> : vector<1x32xf32>
    %49 = vector.multi_reduction <maximumf>, %48, %cst_17 [2] : vector<1x32x32xf32> to vector<1x32xf32>
    %50 = vector.shape_cast %49 : vector<1x32xf32> to vector<1x32x1xf32>
    %51 = vector.broadcast %50 : vector<1x32x1xf32> to vector<1x32x32xf32>
    %52 = arith.subf %48, %51 : vector<1x32x32xf32>
    %53 = math.exp %52 : vector<1x32x32xf32>
    %cst_18 = arith.constant dense<0.000000e+00> : vector<1x32xf32>
    %54 = vector.multi_reduction <add>, %53, %cst_18 [2] : vector<1x32x32xf32> to vector<1x32xf32>
    %55 = vector.shape_cast %54 : vector<1x32xf32> to vector<1x32x1xf32>
    "tpu.trace_start"() <{level = 10 : i32, message = "glm,gmd->gld"}> : () -> ()
    %cst_19 = arith.constant dense<0.000000e+00> : vector<1x32x8xf32>
    %56 = tpu.matmul %53, %45, %cst_19 {dimension_numbers = #tpu.dot_dimension_numbers<[2], [1], [1], [2], [0, 0, 0, 1, 1, 2], [0], [0]>} : vector<1x32x32xf32>, vector<1x32x8xf32>, vector<1x32x8xf32> -> vector<1x32x8xf32>
    "tpu.trace_stop"() : () -> ()
    %57 = tpu.reciprocal %55 : vector<1x32x1xf32> -> vector<1x32x1xf32>
    %58 = vector.broadcast %57 : vector<1x32x1xf32> to vector<1x32x8xf32>
    %59 = arith.mulf %56, %58 : vector<1x32x8xf32>
    %60 = vector.extract_strided_slice %7 {offsets = [0, 0, 24], sizes = [1, 32, 8], strides = [1, 1, 1]} : vector<1x32x96xf32> to vector<1x32x8xf32>
    %61 = vector.extract_strided_slice %7 {offsets = [0, 0, 56], sizes = [1, 32, 8], strides = [1, 1, 1]} : vector<1x32x96xf32> to vector<1x32x8xf32>
    %62 = vector.extract_strided_slice %7 {offsets = [0, 0, 88], sizes = [1, 32, 8], strides = [1, 1, 1]} : vector<1x32x96xf32> to vector<1x32x8xf32>
    "tpu.trace_start"() <{level = 10 : i32, message = "gld,gmd->glm"}> : () -> ()
    %cst_20 = arith.constant dense<0.000000e+00> : vector<1x32x32xf32>
    %63 = tpu.matmul %60, %61, %cst_20 {dimension_numbers = #tpu.dot_dimension_numbers<[2], [2], [1], [1], [0, 0, 0, 1, 1, 1], [0], [0]>} : vector<1x32x8xf32>, vector<1x32x8xf32>, vector<1x32x32xf32> -> vector<1x32x32xf32>
    "tpu.trace_stop"() : () -> ()
    %64 = vector.shape_cast %8 : vector<32x32xf32> to vector<1x32x32xf32>
    %65 = arith.addf %63, %64 : vector<1x32x32xf32>
    %cst_21 = arith.constant dense<0xFF800000> : vector<1x32xf32>
    %66 = vector.multi_reduction <maximumf>, %65, %cst_21 [2] : vector<1x32x32xf32> to vector<1x32xf32>
    %67 = vector.shape_cast %66 : vector<1x32xf32> to vector<1x32x1xf32>
    %68 = vector.broadcast %67 : vector<1x32x1xf32> to vector<1x32x32xf32>
    %69 = arith.subf %65, %68 : vector<1x32x32xf32>
    %70 = math.exp %69 : vector<1x32x32xf32>
    %cst_22 = arith.constant dense<0.000000e+00> : vector<1x32xf32>
    %71 = vector.multi_reduction <add>, %70, %cst_22 [2] : vector<1x32x32xf32> to vector<1x32xf32>
    %72 = vector.shape_cast %71 : vector<1x32xf32> to vector<1x32x1xf32>
    "tpu.trace_start"() <{level = 10 : i32, message = "glm,gmd->gld"}> : () -> ()
    %cst_23 = arith.constant dense<0.000000e+00> : vector<1x32x8xf32>
    %73 = tpu.matmul %70, %62, %cst_23 {dimension_numbers = #tpu.dot_dimension_numbers<[2], [1], [1], [2], [0, 0, 0, 1, 1, 2], [0], [0]>} : vector<1x32x32xf32>, vector<1x32x8xf32>, vector<1x32x8xf32> -> vector<1x32x8xf32>
    "tpu.trace_stop"() : () -> ()
    %74 = tpu.reciprocal %72 : vector<1x32x1xf32> -> vector<1x32x1xf32>
    %75 = vector.broadcast %74 : vector<1x32x1xf32> to vector<1x32x8xf32>
    %76 = arith.mulf %73, %75 : vector<1x32x8xf32>
    %77 = tpu.concatenate %25, %42, %59, %76 in 2 : vector<1x32x8xf32>, vector<1x32x8xf32>, vector<1x32x8xf32>, vector<1x32x8xf32> -> vector<1x32x32xf32>
    %78 = vector.shape_cast %77 : vector<1x32x32xf32> to vector<32x32xf32>
    %c0_24 = arith.constant 0 : index
    %c0_25 = arith.constant 0 : index
    %79 = vector.load %arg4[%c0_24, %c0_25] : memref<32x32xf32, #tpu.memory_space<vmem>>, vector<32x32xf32>
    %cst_26 = arith.constant dense<0.000000e+00> : vector<32x32xf32>
    %80 = tpu.matmul %78, %79, %cst_26 {dimension_numbers = #tpu.dot_dimension_numbers<[1], [0], [0], [1], [0, 0, 1, 1], [], []>} : vector<32x32xf32>, vector<32x32xf32>, vector<32x32xf32> -> vector<32x32xf32>
    %c0_27 = arith.constant 0 : index
    %c0_28 = arith.constant 0 : index
    %81 = vector.load %arg5[%c0_27, %c0_28] : memref<1x32xf32, #tpu.memory_space<vmem>>, vector<1x32xf32>
    %82 = vector.broadcast %81 : vector<1x32xf32> to vector<32x32xf32>
    %83 = arith.addf %80, %82 : vector<32x32xf32>
    %84 = arith.addf %83, %1 : vector<32x32xf32>
    %85 = vector.shape_cast %84 : vector<32x32xf32> to vector<4x8x32xf32>
    %cst_29 = arith.constant dense<0.000000e+00> : vector<4x8xf32>
    %86 = vector.multi_reduction <add>, %85, %cst_29 [2] : vector<4x8x32xf32> to vector<4x8xf32>
    %87 = vector.shape_cast %86 : vector<4x8xf32> to vector<4x8x1xf32>
    %cst_30 = arith.constant dense<0.000000e+00> : vector<4x1xf32>
    %88 = vector.multi_reduction <add>, %87, %cst_30 [1] : vector<4x8x1xf32> to vector<4x1xf32>
    %89 = vector.shape_cast %88 : vector<4x1xf32> to vector<4x1x1xf32>
    %90 = arith.mulf %85, %85 : vector<4x8x32xf32>
    %cst_31 = arith.constant dense<0.000000e+00> : vector<4x8xf32>
    %91 = vector.multi_reduction <add>, %90, %cst_31 [2] : vector<4x8x32xf32> to vector<4x8xf32>
    %92 = vector.shape_cast %91 : vector<4x8xf32> to vector<4x8x1xf32>
    %cst_32 = arith.constant dense<0.000000e+00> : vector<4x1xf32>
    %93 = vector.multi_reduction <add>, %92, %cst_32 [1] : vector<4x8x1xf32> to vector<4x1xf32>
    %94 = vector.shape_cast %93 : vector<4x1xf32> to vector<4x1x1xf32>
    %cst_33 = arith.constant 3.906250e-03 : f32
    %95 = vector.broadcast %cst_33 : f32 to vector<4x1x1xf32>
    %96 = arith.mulf %89, %95 : vector<4x1x1xf32>
    %cst_34 = arith.constant 3.906250e-03 : f32
    %97 = vector.broadcast %cst_34 : f32 to vector<4x1x1xf32>
    %98 = arith.mulf %94, %97 : vector<4x1x1xf32>
    %99 = arith.mulf %96, %96 : vector<4x1x1xf32>
    %100 = arith.subf %98, %99 : vector<4x1x1xf32>
    %cst_35 = arith.constant 9.99999997E-7 : f32
    %101 = vector.broadcast %cst_35 : f32 to vector<4x1x1xf32>
    %102 = arith.addf %100, %101 : vector<4x1x1xf32>
    %103 = math.rsqrt %102 : vector<4x1x1xf32>
    %c0_36 = arith.constant 0 : index
    %c0_37 = arith.constant 0 : index
    %104 = vector.load %arg6[%c0_36, %c0_37] : memref<8x32xf32, #tpu.memory_space<vmem>>, vector<8x32xf32>
    %105 = vector.shape_cast %104 : vector<8x32xf32> to vector<1x8x32xf32>
    %c0_38 = arith.constant 0 : index
    %c0_39 = arith.constant 0 : index
    %106 = vector.load %arg7[%c0_38, %c0_39] : memref<8x32xf32, #tpu.memory_space<vmem>>, vector<8x32xf32>
    %107 = vector.shape_cast %106 : vector<8x32xf32> to vector<1x8x32xf32>
    %108 = vector.broadcast %96 : vector<4x1x1xf32> to vector<4x8x32xf32>
    %109 = arith.subf %85, %108 : vector<4x8x32xf32>
    %110 = vector.broadcast %103 : vector<4x1x1xf32> to vector<4x8x32xf32>
    %111 = arith.mulf %109, %110 : vector<4x8x32xf32>
    %112 = vector.broadcast %105 : vector<1x8x32xf32> to vector<4x8x32xf32>
    %113 = arith.mulf %111, %112 : vector<4x8x32xf32>
    %114 = vector.broadcast %107 : vector<1x8x32xf32> to vector<4x8x32xf32>
    %115 = arith.addf %113, %114 : vector<4x8x32xf32>
    %116 = arith.addf %115, %85 : vector<4x8x32xf32>
    %117 = vector.shape_cast %116 : vector<4x8x32xf32> to vector<1x32x32xf32>
    %c0_40 = arith.constant 0 : index
    %c0_41 = arith.constant 0 : index
    %c0_42 = arith.constant 0 : index
    %118 = vector.load %arg9[%c0_40, %c0_41, %c0_42] : memref<1x32x32xf32, #tpu.memory_space<vmem>>, vector<1x32x32xf32>
    tpu.vector_store %arg9[%c0_40, %c0_41, %c0_42], %117 {strides = array<i32>} : memref<1x32x32xf32, #tpu.memory_space<vmem>>, vector<1x32x32xf32>,
    return
  }
  func.func @transform_0(%arg0: i32) -> (i32, i32, i32) {
    %c0_i32 = arith.constant 0 : i32
    %c0_i32_0 = arith.constant 0 : i32
    %c0_i32_1 = arith.constant 0 : i32
    return %arg0, %c0_i32, %c0_i32_0 : i32, i32, i32
  }
  func.func @transform_1(%arg0: i32) -> (i32, i32) {
    %c0_i32 = arith.constant 0 : i32
    %c0_i32_0 = arith.constant 0 : i32
    %c0_i32_1 = arith.constant 0 : i32
    return %c0_i32, %c0_i32_0 : i32, i32
  }
  func.func @transform_2(%arg0: i32) -> (i32, i32) {
    %c0_i32 = arith.constant 0 : i32
    %c0_i32_0 = arith.constant 0 : i32
    %c0_i32_1 = arith.constant 0 : i32
    return %c0_i32, %c0_i32_0 : i32, i32
  }
  func.func @transform_3(%arg0: i32) -> (i32, i32) {
    %c0_i32 = arith.constant 0 : i32
    %c0_i32_0 = arith.constant 0 : i32
    %c0_i32_1 = arith.constant 0 : i32
    return %c0_i32, %c0_i32_0 : i32, i32
  }
  func.func @transform_4(%arg0: i32) -> (i32, i32) {
    %c0_i32 = arith.constant 0 : i32
    %c0_i32_0 = arith.constant 0 : i32
    %c0_i32_1 = arith.constant 0 : i32
    return %c0_i32, %c0_i32_0 : i32, i32
  }
  func.func @transform_5(%arg0: i32) -> (i32, i32) {
    %c0_i32 = arith.constant 0 : i32
    %c0_i32_0 = arith.constant 0 : i32
    %c0_i32_1 = arith.constant 0 : i32
    return %c0_i32, %c0_i32_0 : i32, i32
  }
  func.func @transform_6(%arg0: i32) -> (i32, i32) {
    %c0_i32 = arith.constant 0 : i32
    %c0_i32_0 = arith.constant 0 : i32
    %c0_i32_1 = arith.constant 0 : i32
    return %c0_i32, %c0_i32_0 : i32, i32
  }
  func.func @transform_7(%arg0: i32) -> (i32, i32) {
    %c0_i32 = arith.constant 0 : i32
    %c0_i32_0 = arith.constant 0 : i32
    %c0_i32_1 = arith.constant 0 : i32
    return %c0_i32, %c0_i32_0 : i32, i32
  }
  func.func @transform_8(%arg0: i32) -> (i32, i32, i32) {
    %c0_i32 = arith.constant 0 : i32
    %c0_i32_0 = arith.constant 0 : i32
    %c0_i32_1 = arith.constant 0 : i32
    return %arg0, %c0_i32, %c0_i32_0 : i32, i32, i32
  }
}

</mosaic_0001>

<bundles_post_ra>
// kernel: transformer_encoder.1
= control target key start
LH: loop header
LB: loop body
LE: loop exit
PB: predicated region body
PF: predicated region fallthrough
CT: control target
= control target key end

     0   :  { %13 = vsyncpa [#allocation3], 0  ;;  %s2742_s0 = inlined_call_operand.hbm [shape: f32[1,32,32], index: 0, kind: input, shape index: {}]   ;;  %s2743_s1 = inlined_call_operand.hbm [shape: f32[32,96], index: 1, kind: input, shape index: {}]   ;;  %s2744_s2 = inlined_call_operand.vmem [shape: f32[1,96], index: 2, kind: input, shape index: {}]   ;;  %s2745_s3 = inlined_call_operand.hbm [shape: f32[32,32], index: 3, kind: input, shape index: {}]   ;;  %s2746_s4 = inlined_call_operand.vmem [shape: f32[1,32], index: 4, kind: input, shape index: {}]   ;;  %s2747_s5 = inlined_call_operand.vmem [shape: f32[8,32], index: 5, kind: input, shape index: {}]   ;;  %s2748_s6 = inlined_call_operand.vmem [shape: f32[8,32], index: 6, kind: input, shape index: {}]   ;;  %s2749_s7 = inlined_call_operand.hbm [shape: f32[32,32], index: 7, kind: input, shape index: {}]   ;;  %s2750_s8 = inlined_call_operand.hbm [shape: f32[1,32,32], index: 8, kind: output, shape index: {}]  }
   0x1   :  { %14 = vsyncpa [#allocation6], 0 }
   0x2   :  { %15 = vsyncpa [#allocation9], 0 }
   0x3   :  { %16 = vsyncpa [#allocation4], 0  ;;  %s2266_s27 = smov [#allocation5]   ;;  %s2267_s29 = smov [#allocation2]  }
   0x4   :  { %s34_s28 = sshll.u32 %s2266_s27, 4  ;;  %s22_s30 = sshll.u32 %s2267_s29, 4  ;;  %s35_s28 = int_to_ptr.vmem [resolvable:$true] %s34_s28  ;;  %s2331_s30 = int_to_ptr.vmem [resolvable:$true] %s22_s30 }
   0x5   :  { %s2148_s11 = scalar_lea.hbm %s2743_s1, 512 }
   0x6   :  { %p2149_p0 = scmp.ne.s32.totalorder %s2743_s1, %s2148_s11  ;;  %p2152_p1 = scmp.lt.u32.totalorder %s2148_s11, %s2743_s1 }
   0x8   :  { %p2154_p2 = pnand %p2152_p1, %p2149_p0 }
   0xa   :  { %2157 = shalt.err (!%p2154_p2)
}
   0xb   :  { %s2158_s16 = scalar_lea.vmem %s35_s28, 512  ;;  %p2163_p4 = scmp.lt.s32.totalorder %s35_s28, %s35_s28 }
   0xc   :  { %p2159_p3 = scmp.ne.s32.totalorder %s35_s28, %s2158_s16  ;;  %p2164_p5 = scmp.lt.s32.totalorder %s2158_s16, %s2158_s16 }
   0xe   :  { %p2165_p6 = por %p2164_p5, %p2163_p4 }
  0x10   :  { %p2166_p7 = pnand %p2165_p6, %p2159_p3 }
  0x12   :  { %2169 = shalt.err (!%p2166_p7)
}
  0x13   :  { %s2268_s17 = smov 128   ;;  %s2269_s18 = smov 8  }
  0x14   :  { %40 = dma.hbm_to_vmem [thread:$0]  %s2743_s1, 512, %s35_s28, [#allocation6], %s2268_s17, %s2268_s17, %s2269_s18  }
  0x15   :  { %s2170_s23 = scalar_lea.hbm %s2742_s0, 512 }
  0x16   :  { %p2171_p8 = scmp.ne.s32.totalorder %s2742_s0, %s2170_s23  ;;  %p2174_p9 = scmp.lt.u32.totalorder %s2170_s23, %s2742_s0 }
  0x18   :  { %p2176_p10 = pnand %p2174_p9, %p2171_p8 }
  0x1a   :  { %2179 = shalt.err (!%p2176_p10)
}
  0x1b   :  { %s2180_s29 = scalar_lea.vmem %s2331_s30, 512  ;;  %p2185_p12 = scmp.lt.s32.totalorder %s2331_s30, %s2331_s30 }
  0x1c   :  { %p2181_p11 = scmp.ne.s32.totalorder %s2331_s30, %s2180_s29  ;;  %p2186_p13 = scmp.lt.s32.totalorder %s2180_s29, %s2180_s29 }
  0x1e   :  { %p2187_p0 = por %p2186_p13, %p2185_p12 }
  0x20   :  { %p2188_p1 = pnand %p2187_p0, %p2181_p11 }
  0x22   :  { %2191 = shalt.err (!%p2188_p1)
}
  0x23   :  { %28 = dma.hbm_to_vmem [thread:$0]  %s2742_s0, 512, %s2331_s30, [#allocation3], %s2268_s17, %s2268_s17, %s2269_s18  }
  0x24   :  { %s2270_s9 = smov [#allocation7]   ;;  %s2271_s11 = smov [#allocation8]  }
  0x25   :  { %s48_s10 = sshll.u32 %s2270_s9, 4  ;;  %s66_s12 = sshll.u32 %s2271_s11, 4  ;;  %s49_s10 = int_to_ptr.vmem [resolvable:$true] %s48_s10  ;;  %s2368_s12 = int_to_ptr.vmem [resolvable:$true] %s66_s12 }
  0x26   :  { %s2192_s15 = scalar_lea.hbm %s2745_s3, 512 }
  0x27   :  { %p2193_p2 = scmp.ne.s32.totalorder %s2745_s3, %s2192_s15  ;;  %p2196_p3 = scmp.lt.u32.totalorder %s2192_s15, %s2745_s3 }
  0x29   :  { %p2198_p4 = pnand %p2196_p3, %p2193_p2 }
  0x2b   :  { %2201 = shalt.err (!%p2198_p4)
}
  0x2c   :  { %s2202_s0 = scalar_lea.vmem %s49_s10, 512  ;;  %p2207_p6 = scmp.lt.s32.totalorder %s49_s10, %s49_s10 }
  0x2d   :  { %p2203_p5 = scmp.ne.s32.totalorder %s49_s10, %s2202_s0  ;;  %p2208_p7 = scmp.lt.s32.totalorder %s2202_s0, %s2202_s0 }
  0x2f   :  { %p2209_p8 = por %p2208_p7, %p2207_p6 }
  0x31   :  { %p2210_p9 = pnand %p2209_p8, %p2203_p5 }
  0x33   :  { %2213 = shalt.err (!%p2210_p9)
}
  0x34   :  { %54 = dma.hbm_to_vmem [thread:$0]  %s2745_s3, 512, %s49_s10, [#allocation6], %s2268_s17, %s2268_s17, %s2269_s18  }
  0x35   :  { %s2214_s25 = scalar_lea.hbm %s2749_s7, 512 }
  0x36   :  { %p2215_p10 = scmp.ne.s32.totalorder %s2749_s7, %s2214_s25  ;;  %p2218_p11 = scmp.lt.u32.totalorder %s2214_s25, %s2749_s7 }
  0x38   :  { %p2220_p12 = pnand %p2218_p11, %p2215_p10 }
  0x3a   :  { %2223 = shalt.err (!%p2220_p12)
}
  0x3b   :  { %s2224_s28 = scalar_lea.vmem %s2368_s12, 512  ;;  %p2229_p0 = scmp.lt.s32.totalorder %s2368_s12, %s2368_s12 }
  0x3c   :  { %p2225_p13 = scmp.ne.s32.totalorder %s2368_s12, %s2224_s28  ;;  %p2230_p1 = scmp.lt.s32.totalorder %s2224_s28, %s2224_s28 }
  0x3e   :  { %p2231_p2 = por %p2230_p1, %p2229_p0 }
  0x40   :  { %p2232_p3 = pnand %p2231_p2, %p2225_p13 }
  0x42   :  { %2235 = shalt.err (!%p2232_p3)
}
  0x43   :  { %72 = dma.hbm_to_vmem [thread:$0]  %s2749_s7, 512, %s2368_s12, [#allocation9], %s2268_s17, %s2268_s17, %s2269_s18  }
  0x44   :  { %2258 = dma.done.wait [#allocation3], 512  }
  0x45   :  { %2259 = vsyncadd [#allocation3], 4294966784 }
  0x46   :  { %2260 = dma.done.wait [#allocation6], 1024  }
  0x47   :  { %2261 = vsyncadd [#allocation6], 4294966272 }
  0x48   :  { %2262 = dma.done.wait [#allocation9], 512  }
  0x49   :  { %2263 = vsyncadd [#allocation9], 4294966784  ;;  %vm100_vm0 = vcmask 261120   ;;  %v89_v0 = vld [vmem:[#allocation5] sm:$0xff]  ;;  %v90_v1 = vld [vmem:[#allocation5 + $0x8] sm:$0xff]  ;;  %vm214_vm1 = vcmask 64512  }
  0x4a   :  { %v91_v2 = vld [vmem:[#allocation5 + $0x10] sm:$0xff]  ;;  %v1876_v3 = vpack.c.bf16 %v90_v1, %v89_v0  ;;  %v92_v4 = vld [vmem:[#allocation5 + $0x18] sm:$0xff]  ;;  %v85_v5 = vld [vmem:[#allocation2] sm:$0xff]  ;;  %s2272_s11 = smov 96   ;;  %s2274_s12 = smov 120   ;;  %vm1331_vm3 = vcmask 130048  }
  0x4b   :  { %v1880_v6 = vpack.c.bf16 %v92_v4, %v91_v2  ;;  %1744 = vmatprep.mubr.msk.f32.mxu0 %vm100_vm0, %v85_v5  ;;  %v86_v7 = vld [vmem:[#allocation2 + $0x8] sm:$0xff]  ;;  %v87_v8 = vld [vmem:[#allocation2 + $0x10] sm:$0xff]  ;;  %v88_v9 = vld [vmem:[#allocation2 + $0x18] sm:$0xff]  ;;  %s2275_s13 = smov 88   ;;  %s2276_s14 = smov 56   ;;  %vm1336_vm4 = vcmask 195584  }
  0x4c   :  { %1877 = vmatprep.subr.bf16.mxu0 %v1876_v3  ;;  %v1598_v10 = vld [vmem:[%s2744_s2] ss:$0 sm:$0xff]  ;;  %vm2434_vm2 = vmpackc.low %vm214_vm1, %vm214_vm1  ;;  %v2452_v30 = vld [vmem:[#allocation8 + $0x8] sm:$0xff]  ;;  %s2273_s2 = smov 64   ;;  %s2277_s15 = smov 80  }
  0x4d   :  { %1879 = vmatpush3.bf16.msra.mxu0 %v1876_v3  ;;  %v2454_v32 = vld [vmem:[#allocation8] sm:$0xff]  ;;  %v2459_v37 = vld [vmem:[#allocation8 + $0x10] sm:$0xff]  ;;  %v2461_v38 = vld [vmem:[#allocation8 + $0x18] sm:$0xff]  ;;  %s2278_s16 = smov 112   ;;  %s2279_s19 = smov 48  }
  0x4e   :  { %1881 = vmatprep.subr.bf16.mxu0 %v1880_v6  ;;  %s2280_s20 = smov 72   ;;  %s2281_s21 = smov 104  }
  0x4f   :  { %s2282_s0 = smov 40   ;;  %s2283_s30 = smov 16  }
  0x50   :  { %s2284_s22 = smov 24  }
  0x51   :  { %1883 = vmatpush3.bf16.msra.mxu0 %v1880_v6 }
  0x54   :  { %1745 = vmatmul.mubr.msk.f32.vlgmr.msra.gmra.mrb[0].mxu0 %vm100_vm0, %v86_v7 }
  0x55   :  { %1747 = vmatprep.mubr.msk.f32.mxu0 %vm100_vm0, %v87_v8 }
  0x58   :  { %1748 = vmatmul.mubr.msk.f32.gmra.mrb[2].mxu0 %vm100_vm0, %v88_v9 }
 0x127   :  { %v1746_v11 = vpop.f32.mrb[0].mxu0 }
 0x128   :  { %v2412_v12 = vadd.f32 %v1746_v11, %v1598_v10  ;;  %v179_v13 = vpop.f32.mrb[1].mxu0 }
 0x129   :  { %v2414_v14 = vadd.f32 %v1598_v10, %v179_v13 }
 0x12b   :  { %1758 = vmatprep.mubr.msk.f32.mxu1 %vm214_vm1, %v2414_v14  ;;  %v2420_v15 = vpack.i.bf16 %v2412_v12, %v2414_v14  ;;  %v1749_v16 = vpop.f32.mrb[2].mxu0 }
 0x12c   :  { %v2422_v17 = vadd.f32 %v1749_v16, %v1598_v10  ;;  %v189_v18 = vpop.f32.mrb[3].mxu0 }
 0x12d   :  { %1993 = vrot.lane.b32.xlu0 %v2420_v15, %s2272_s11  ;;  %v2425_v19 = vadd.f32 %v1598_v10, %v189_v18 }
 0x12f   :  { %v2429_v20 = vpack.i.bf16 %v2422_v17, %v2425_v19 }
 0x131   :  { %1998 = vrot.lane.b32.xlu0 %v2429_v20, %s2272_s11 }
 0x19f   :  { %v1994_v21 = vpop.permute.xlu0 %1993 }
 0x1a0   :  { %v1996_v22 = vunpack.i.h.bf16 %v1994_v21  ;;  %v1995_v23 = vunpack.i.l.bf16 %v1994_v21 }
 0x1a2   :  { %v1884_v25 = vpack.c.bf16 %v1996_v22, %v1995_v23 }
 0x1a3   :  { %v1999_v26 = vpop.permute.xlu0 %1998 }
 0x1a4   :  { %1886 = vmatprep.subr.msk.bf16.mxu1 %vm2434_vm2, %v1884_v25  ;;  %v2001_v27 = vunpack.i.h.bf16 %v1999_v26  ;;  %v2000_v28 = vunpack.i.l.bf16 %v1999_v26 }
 0x1a5   :  { %1889 = vmatpush3.bf16.xpose.msk.msra.mxu1 %vm2434_vm2, %v1884_v25 }
 0x1a6   :  { %v1890_v29 = vpack.c.bf16 %v2001_v27, %v2000_v28 }
 0x1a8   :  { %1892 = vmatprep.subr.msk.bf16.mxu1 %vm2434_vm2, %v1890_v29 }
 0x1ad   :  { %1895 = vmatpush3.bf16.xpose.msk.msra.mxu1 %vm2434_vm2, %v1890_v29 }
 0x1b4   :  { %1759 = vmatmul.mubr.msk.f32.vlgmr.msra.gmra.mrb[0].mxu1 %vm214_vm1, %v2412_v12 }
 0x1b5   :  { %1761 = vmatprep.mubr.msk.f32.mxu1 %vm214_vm1, %v2425_v19 }
 0x1b8   :  { %1762 = vmatmul.mubr.msk.f32.gmra.mrb[2].mxu1 %vm214_vm1, %v2422_v17 }
 0x287   :  { %v1760_v31 = vpop.f32.mrb[0].mxu1 }
 0x288   :  { %v303_v33 = vadd.f32 %v1760_v31, %v2452_v30  ;;  %v297_v34 = vpop.f32.mrb[1].mxu1 }
 0x289   :  { %v298_v35 = vadd.f32 %v297_v34, %v2454_v32 }
 0x28a   :  { %v319_v36 = vsel %vm100_vm0, %v303_v33, -inf }
 0x28b   :  { %320 = vmax.xlane.f32.xlu1 %v319_v36  ;;  %v1763_v39 = vpop.f32.mrb[2].mxu1  ;;  %v316_v43 = vsel %vm100_vm0, %v298_v35, -inf }
 0x28c   :  { %v307_v40 = vpop.f32.mrb[3].mxu1  ;;  %v313_v42 = vadd.f32 %v1763_v39, %v2461_v38 }
 0x28d   :  { %v308_v41 = vadd.f32 %v307_v40, %v2459_v37 }
 0x28e   :  { %v325_v45 = vsel %vm100_vm0, %v313_v42, -inf }
 0x28f   :  { %317 = vmax.xlane.f32.xlu1 %v316_v43  ;;  %v322_v44 = vsel %vm100_vm0, %v308_v41, -inf }
 0x290   :  { %323 = vmax.xlane.f32.xlu0 %v322_v44 }
 0x293   :  { %326 = vmax.xlane.f32.xlu1 %v325_v45 }
 0x2a4   :  { %2003 = vrot.lane.b32.xlu1 %v2420_v15, %s2273_s2 }
 0x2a6   :  { %469 = vrot.lane.b32.xlu0 %v2414_v14, %s2274_s12 }
 0x2a8   :  { %2008 = vrot.lane.b32.xlu1 %v2429_v20, %s2273_s2 }
 0x2ac   :  { %2013 = vrot.lane.b32.xlu1 %v2420_v15, %s2275_s13 }
 0x2b0   :  { %2018 = vrot.lane.b32.xlu1 %v2429_v20, %s2275_s13 }
 0x2b4   :  { %471 = vrot.lane.b32.xlu1 %v2412_v12, %s2274_s12 }
 0x2b8   :  { %473 = vrot.lane.b32.xlu1 %v2425_v19, %s2274_s12 }
 0x2bc   :  { %475 = vrot.lane.b32.xlu1 %v2422_v17, %s2274_s12 }
 0x2c0   :  { %2023 = vrot.lane.b32.xlu1 %v2420_v15, %s2276_s14 }
 0x318   :  { %v321_v46 = vpop.xlane.xlu1 %320 }
 0x319   :  { %v329_v50 = vsub.f32 %v303_v33, %v321_v46 }
 0x31b   :  { %v334_v54 = vmul.f32 1.442695, %v329_v50 }
 0x31c   :  { %v318_v47 = vpop.xlane.xlu1 %317 }
 0x31d   :  { %v328_v48 = vsub.f32 %v298_v35, %v318_v47  ;;  %v324_v49 = vpop.xlane.xlu0 %323 }
 0x31e   :  { %v330_v52 = vsub.f32 %v308_v41, %v324_v49 }
 0x31f   :  { %v332_v51 = vmul.f32 1.442695, %v328_v48 }
 0x320   :  { %v327_v53 = vpop.xlane.xlu1 %326  ;;  %v336_v56 = vmul.f32 1.442695, %v330_v52 }
 0x321   :  { %2072 = vpow2.f32 %v332_v51  ;;  %v331_v55 = vsub.f32 %v313_v42, %v327_v53  ;;  %v470_v18 = vpop.permute.xlu0 %469 }
 0x322   :  { %2074 = vpow2.f32 %v334_v54 }
 0x323   :  { %v338_v60 = vmul.f32 1.442695, %v331_v55  ;;  %2076 = vpow2.f32 %v336_v56 }
 0x324   :  { %v2004_v57 = vpop.permute.xlu1 %2003 }
 0x325   :  { %v2006_v58 = vunpack.i.h.bf16 %v2004_v57  ;;  %v2005_v59 = vunpack.i.l.bf16 %v2004_v57  ;;  %2078 = vpow2.f32 %v338_v60 }
 0x327   :  { %v1896_v61 = vpack.c.bf16 %v2006_v58, %v2005_v59 }
 0x328   :  { %v2009_v62 = vpop.permute.xlu1 %2008 }
 0x329   :  { %v2011_v63 = vunpack.i.h.bf16 %v2009_v62  ;;  %v2010_v0 = vunpack.i.l.bf16 %v2009_v62  ;;  %1897 = vmatprep.subr.bf16.mxu0 %v1896_v61 }
 0x32a   :  { %1899 = vmatpush3.bf16.msra.mxu0 %v1896_v61 }
 0x32b   :  { %v2478_v1 = vpop.eup %2072  ;;  %v1900_v2 = vpack.c.bf16 %v2011_v63, %v2010_v0 }
 0x32c   :  { %1772 = vmatprep.mubr.msk.f32.mxu0 %vm100_vm0, %v2478_v1  ;;  %v2014_v3 = vpop.permute.xlu1 %2013  ;;  %v2482_v7 = vpop.eup %2074 }
 0x32d   :  { %v2016_v4 = vunpack.i.h.bf16 %v2014_v3  ;;  %v2015_v5 = vunpack.i.l.bf16 %v2014_v3  ;;  %1901 = vmatprep.subr.bf16.mxu0 %v1900_v2  ;;  %v2484_v9 = vpop.eup %2076 }
 0x32e   :  { %1903 = vmatpush3.bf16.msra.mxu0 %v1900_v2 }
 0x32f   :  { %v1904_v6 = vpack.c.bf16 %v2016_v4, %v2015_v5  ;;  %v2492_v13 = vpop.eup %2078 }
 0x330   :  { %v2019_v8 = vpop.permute.xlu1 %2018 }
 0x331   :  { %1773 = vmatmul.mubr.msk.f32.vlgmr.msra.gmra.mrb[4].mxu0 %vm100_vm0, %v2482_v7  ;;  %1906 = vmatprep.subr.msk.bf16.mxu0 %vm2434_vm2, %v1904_v6  ;;  %v2021_v10 = vunpack.i.h.bf16 %v2019_v8  ;;  %v2020_v11 = vunpack.i.l.bf16 %v2019_v8 }
 0x332   :  { %1775 = vmatprep.mubr.msk.f32.mxu0 %vm100_vm0, %v2484_v9 }
 0x333   :  { %v1910_v21 = vpack.c.bf16 %v2021_v10, %v2020_v11 }
 0x334   :  { %v472_v16 = vpop.permute.xlu1 %471 }
 0x335   :  { %1776 = vmatmul.mubr.msk.f32.gmra.mrb[6].mxu0 %vm100_vm0, %v2492_v13 }
 0x336   :  { %1786 = vmatprep.mubr.msk.f32.mxu0 %vm214_vm1, %v470_v18 }
 0x337   :  { %1909 = vmatpush3.bf16.xpose.msk.msra.mxu0 %vm2434_vm2, %v1904_v6 }
 0x338   :  { %v474_v22 = vpop.permute.xlu1 %473  ;;  %1912 = vmatprep.subr.msk.bf16.mxu0 %vm2434_vm2, %v1910_v21 }
 0x33c   :  { %v476_v23 = vpop.permute.xlu1 %475 }
 0x33f   :  { %1915 = vmatpush3.bf16.xpose.msk.msra.mxu0 %vm2434_vm2, %v1910_v21 }
 0x340   :  { %v2024_v25 = vpop.permute.xlu1 %2023 }
 0x341   :  { %v2026_v26 = vunpack.i.h.bf16 %v2024_v25  ;;  %v2025_v27 = vunpack.i.l.bf16 %v2024_v25 }
 0x343   :  { %v1916_v28 = vpack.c.bf16 %v2026_v26, %v2025_v27 }
 0x345   :  { %1917 = vmatprep.subr.bf16.mxu1 %v1916_v28 }
 0x346   :  { %1787 = vmatmul.mubr.msk.f32.vlgmr.msra.gmra.mrb[8].mxu0 %vm214_vm1, %v472_v16  ;;  %1919 = vmatpush3.bf16.msra.mxu1 %v1916_v28 }
 0x347   :  { %1789 = vmatprep.mubr.msk.f32.mxu0 %vm214_vm1, %v474_v22 }
 0x34a   :  { %1790 = vmatmul.mubr.msk.f32.gmra.mrb[10].mxu0 %vm214_vm1, %v476_v23 }
 0x404   :  { %v2506_v29 = vpop.f32.mrb[4].mxu0 }
 0x405   :  { %v2508_v31 = vpop.f32.mrb[5].mxu0 }
 0x408   :  { %v2510_v33 = vpop.f32.mrb[6].mxu0 }
 0x409   :  { %v2512_v34 = vpop.f32.mrb[7].mxu0 }
 0x419   :  { %v1788_v35 = vpop.f32.mrb[8].mxu0 }
 0x41a   :  { %v573_v36 = vadd.f32 %v1788_v35, %v2452_v30  ;;  %v567_v39 = vpop.f32.mrb[9].mxu0 }
 0x41b   :  { %v568_v40 = vadd.f32 %v567_v39, %v2454_v32 }
 0x41c   :  { %v589_v41 = vsel %vm100_vm0, %v573_v36, -inf }
 0x41d   :  { %590 = vmax.xlane.f32.xlu0 %v589_v41  ;;  %v1791_v42 = vpop.f32.mrb[10].mxu0  ;;  %v586_v43 = vsel %vm100_vm0, %v568_v40, -inf }
 0x41e   :  { %v583_v44 = vadd.f32 %v1791_v42, %v2461_v38  ;;  %v577_v45 = vpop.f32.mrb[11].mxu0  ;;  %587 = vmax.xlane.f32.xlu1 %v586_v43 }
 0x41f   :  { %v578_v47 = vadd.f32 %v577_v45, %v2459_v37 }
 0x420   :  { %v595_v46 = vsel %vm100_vm0, %v583_v44, -inf }
 0x421   :  { %596 = vmax.xlane.f32.xlu0 %v595_v46  ;;  %v592_v48 = vsel %vm100_vm0, %v578_v47, -inf }
 0x42f   :  { %2033 = vrot.lane.b32.xlu1 %v2420_v15, %s2277_s15 }
 0x433   :  { %2038 = vrot.lane.b32.xlu1 %v2429_v20, %s2277_s15 }
 0x437   :  { %2028 = vrot.lane.b32.xlu0 %v2429_v20, %s2276_s14 }
 0x43b   :  { %739 = vrot.lane.b32.xlu0 %v2414_v14, %s2278_s16 }
 0x43f   :  { %743 = vrot.lane.b32.xlu0 %v2425_v19, %s2278_s16 }
 0x457   :  { %593 = vmax.xlane.f32.xlu1 %v592_v48 }
 0x468   :  { %741 = vrot.lane.b32.xlu1 %v2412_v12, %s2278_s16 }
 0x46c   :  { %745 = vrot.lane.b32.xlu1 %v2422_v17, %s2278_s16 }
 0x470   :  { %2043 = vrot.lane.b32.xlu1 %v2420_v15, %s2279_s19 }
 0x4aa   :  { %v591_v49 = vpop.xlane.xlu0 %590 }
 0x4ab   :  { %v599_v50 = vsub.f32 %v573_v36, %v591_v49  ;;  %v588_v51 = vpop.xlane.xlu1 %587 }
 0x4ac   :  { %v598_v52 = vsub.f32 %v568_v40, %v588_v51 }
 0x4ad   :  { %v604_v53 = vmul.f32 1.442695, %v599_v50 }
 0x4ae   :  { %v602_v54 = vmul.f32 1.442695, %v598_v52  ;;  %v597_v55 = vpop.xlane.xlu0 %596 }
 0x4af   :  { %v2034_v56 = vpop.permute.xlu1 %2033  ;;  %v601_v8 = vsub.f32 %v583_v44, %v597_v55 }
 0x4b0   :  { %2080 = vpow2.f32 %v602_v54  ;;  %v2036_v58 = vunpack.i.h.bf16 %v2034_v56  ;;  %v2035_v59 = vunpack.i.l.bf16 %v2034_v56 }
 0x4b1   :  { %2082 = vpow2.f32 %v604_v53  ;;  %v608_v16 = vmul.f32 1.442695, %v601_v8 }
 0x4b2   :  { %v2029_v57 = vpop.permute.xlu0 %2028  ;;  %v1924_v63 = vpack.c.bf16 %v2036_v58, %v2035_v59 }
 0x4b3   :  { %v2031_v60 = vunpack.i.h.bf16 %v2029_v57  ;;  %v2030_v61 = vunpack.i.l.bf16 %v2029_v57  ;;  %v2039_v0 = vpop.permute.xlu1 %2038 }
 0x4b4   :  { %v2041_v4 = vunpack.i.h.bf16 %v2039_v0  ;;  %v2040_v5 = vunpack.i.l.bf16 %v2039_v0 }
 0x4b5   :  { %v1920_v62 = vpack.c.bf16 %v2031_v60, %v2030_v61 }
 0x4b6   :  { %v1930_v6 = vpack.c.bf16 %v2041_v4, %v2040_v5  ;;  %v740_v28 = vpop.permute.xlu0 %739 }
 0x4b7   :  { %1921 = vmatprep.subr.bf16.mxu1 %v1920_v62 }
 0x4b8   :  { %1923 = vmatpush3.bf16.msra.mxu1 %v1920_v62 }
 0x4b9   :  { %1926 = vmatprep.subr.msk.bf16.mxu1 %vm2434_vm2, %v1924_v63 }
 0x4ba   :  { %v2534_v2 = vpop.eup %2080  ;;  %v744_v39 = vpop.permute.xlu0 %743 }
 0x4bb   :  { %v2536_v3 = vpop.eup %2082  ;;  %1800 = vmatprep.mubr.msk.f32.mxu1 %vm100_vm0, %v2534_v2 }
 0x4bc   :  { %1801 = vmatmul.mubr.msk.f32.vlgmr.msra.gmra.mrb[4].mxu1 %vm100_vm0, %v2536_v3 }
 0x4c1   :  { %1929 = vmatpush3.bf16.xpose.msk.msra.mxu1 %vm2434_vm2, %v1924_v63 }
 0x4c2   :  { %1932 = vmatprep.subr.msk.bf16.mxu1 %vm2434_vm2, %v1930_v6 }
 0x4c9   :  { %1935 = vmatpush3.bf16.xpose.msk.msra.mxu1 %vm2434_vm2, %v1930_v6 }
 0x4e4   :  { %v594_v10 = vpop.xlane.xlu1 %593 }
 0x4e5   :  { %v600_v11 = vsub.f32 %v578_v47, %v594_v10 }
 0x4e7   :  { %v606_v18 = vmul.f32 1.442695, %v600_v11 }
 0x4e8   :  { %v742_v21 = vpop.permute.xlu1 %741 }
 0x4e9   :  { %2084 = vpow2.f32 %v606_v18 }
 0x4ea   :  { %2086 = vpow2.f32 %v608_v16 }
 0x4ec   :  { %v746_v22 = vpop.permute.xlu1 %745 }
 0x4f0   :  { %v2044_v23 = vpop.permute.xlu1 %2043 }
 0x4f1   :  { %v2046_v25 = vunpack.i.h.bf16 %v2044_v23  ;;  %v2045_v26 = vunpack.i.l.bf16 %v2044_v23 }
 0x4f3   :  { %v2548_v27 = vpop.eup %2084  ;;  %v1936_v35 = vpack.c.bf16 %v2046_v25, %v2045_v26 }
 0x4f4   :  { %v2550_v36 = vpop.eup %2086  ;;  %1803 = vmatprep.mubr.msk.f32.mxu1 %vm100_vm0, %v2548_v27 }
 0x4f5   :  { %1804 = vmatmul.mubr.msk.f32.gmra.mrb[6].mxu1 %vm100_vm0, %v2550_v36  ;;  %1937 = vmatprep.subr.bf16.mxu0 %v1936_v35 }
 0x4f6   :  { %1814 = vmatprep.mubr.msk.f32.mxu1 %vm214_vm1, %v740_v28  ;;  %1939 = vmatpush3.bf16.msra.mxu0 %v1936_v35 }
 0x4f9   :  { %1815 = vmatmul.mubr.msk.f32.vlgmr.msra.gmra.mrb[8].mxu1 %vm214_vm1, %v742_v21 }
 0x4fa   :  { %1817 = vmatprep.mubr.msk.f32.mxu1 %vm214_vm1, %v744_v39 }
 0x4fd   :  { %1818 = vmatmul.mubr.msk.f32.gmra.mrb[10].mxu1 %vm214_vm1, %v746_v22 }
 0x58f   :  { %v2560_v40 = vpop.f32.mrb[4].mxu1 }
 0x590   :  { %v2562_v41 = vpop.f32.mrb[5].mxu1 }
 0x5c8   :  { %v2564_v42 = vpop.f32.mrb[6].mxu1 }
 0x5c9   :  { %v2566_v43 = vpop.f32.mrb[7].mxu1 }
 0x5cc   :  { %v1816_v44 = vpop.f32.mrb[8].mxu1 }
 0x5cd   :  { %v843_v45 = vadd.f32 %v1816_v44, %v2452_v30  ;;  %v837_v46 = vpop.f32.mrb[9].mxu1 }
 0x5ce   :  { %v838_v47 = vadd.f32 %v837_v46, %v2454_v32 }
 0x5cf   :  { %v859_v48 = vsel %vm100_vm0, %v843_v45, -inf }
 0x5d0   :  { %860 = vmax.xlane.f32.xlu1 %v859_v48  ;;  %v1819_v49 = vpop.f32.mrb[10].mxu1  ;;  %v856_v50 = vsel %vm100_vm0, %v838_v47, -inf }
 0x5d1   :  { %v853_v51 = vadd.f32 %v1819_v49, %v2461_v38  ;;  %v847_v52 = vpop.f32.mrb[11].mxu1  ;;  %857 = vmax.xlane.f32.xlu0 %v856_v50 }
 0x5d2   :  { %v848_v54 = vadd.f32 %v847_v52, %v2459_v37 }
 0x5d3   :  { %v865_v53 = vsel %vm100_vm0, %v853_v51, -inf }
 0x5d4   :  { %v862_v55 = vsel %vm100_vm0, %v848_v54, -inf }
 0x5d5   :  { %866 = vmax.xlane.f32.xlu0 %v865_v53 }
 0x5d9   :  { %863 = vmax.xlane.f32.xlu0 %v862_v55 }
 0x5e1   :  { %2053 = vrot.lane.b32.xlu1 %v2420_v15, %s2280_s20 }
 0x5e5   :  { %2058 = vrot.lane.b32.xlu1 %v2429_v20, %s2280_s20 }
 0x5e9   :  { %1011 = vrot.lane.b32.xlu1 %v2412_v12, %s2281_s21 }
 0x5ed   :  { %1015 = vrot.lane.b32.xlu1 %v2422_v17, %s2281_s21 }
 0x5ef   :  { %2048 = vrot.lane.b32.xlu0 %v2429_v20, %s2279_s19 }
 0x5f3   :  { %1009 = vrot.lane.b32.xlu0 %v2414_v14, %s2281_s21 }
 0x5f7   :  { %1013 = vrot.lane.b32.xlu0 %v2425_v19, %s2281_s21 }
 0x65d   :  { %v861_v56 = vpop.xlane.xlu1 %860 }
 0x65e   :  { %v858_v57 = vpop.xlane.xlu0 %857  ;;  %v869_v59 = vsub.f32 %v843_v45, %v861_v56 }
 0x65f   :  { %v868_v58 = vsub.f32 %v838_v47, %v858_v57 }
 0x660   :  { %v874_v62 = vmul.f32 1.442695, %v869_v59 }
 0x661   :  { %v872_v60 = vmul.f32 1.442695, %v868_v58  ;;  %v2054_v12 = vpop.permute.xlu1 %2053 }
 0x662   :  { %v867_v61 = vpop.xlane.xlu0 %866  ;;  %v2056_v6 = vunpack.i.h.bf16 %v2054_v12  ;;  %v2055_v14 = vunpack.i.l.bf16 %v2054_v12 }
 0x663   :  { %2088 = vpow2.f32 %v872_v60  ;;  %v871_v63 = vsub.f32 %v853_v51, %v867_v61  ;;  %v616_v61 = vsel %vm100_vm0, %v2548_v27, 0.0 }
 0x664   :  { %2090 = vpow2.f32 %v874_v62  ;;  %v1944_v18 = vpack.c.bf16 %v2056_v6, %v2055_v14 }
 0x665   :  { %v878_v17 = vmul.f32 1.442695, %v871_v63  ;;  %v2059_v21 = vpop.permute.xlu1 %2058 }
 0x666   :  { %v864_v0 = vpop.xlane.xlu0 %863  ;;  %v2061_v23 = vunpack.i.h.bf16 %v2059_v21  ;;  %v2060_v25 = vunpack.i.l.bf16 %v2059_v21 }
 0x667   :  { %v870_v4 = vsub.f32 %v848_v54, %v864_v0 }
 0x668   :  { %v1950_v39 = vpack.c.bf16 %v2061_v23, %v2060_v25 }
 0x669   :  { %v876_v5 = vmul.f32 1.442695, %v870_v4  ;;  %v1012_v44 = vpop.permute.xlu1 %1011 }
 0x66a   :  { %v2049_v8 = vpop.permute.xlu0 %2048 }
 0x66b   :  { %2092 = vpow2.f32 %v876_v5  ;;  %v2051_v19 = vunpack.i.h.bf16 %v2049_v8  ;;  %v2050_v10 = vunpack.i.l.bf16 %v2049_v8 }
 0x66c   :  { %2094 = vpow2.f32 %v878_v17 }
 0x66d   :  { %v2089_v11 = vpop.eup %2088  ;;  %v1940_v16 = vpack.c.bf16 %v2051_v19, %v2050_v10  ;;  %v1016_v46 = vpop.permute.xlu1 %1015 }
 0x66e   :  { %1828 = vmatprep.mubr.msk.f32.mxu0 %vm100_vm0, %v2089_v11  ;;  %v2091_v22 = vpop.eup %2090  ;;  %v1010_v35 = vpop.permute.xlu0 %1009 }
 0x66f   :  { %1941 = vmatprep.subr.bf16.mxu0 %v1940_v16 }
 0x670   :  { %1943 = vmatpush3.bf16.msra.mxu0 %v1940_v16 }
 0x671   :  { %1946 = vmatprep.subr.msk.bf16.mxu0 %vm2434_vm2, %v1944_v18 }
 0x672   :  { %v1014_v45 = vpop.permute.xlu0 %1013 }
 0x673   :  { %1829 = vmatmul.mubr.msk.f32.vlgmr.msra.gmra.mrb[12].mxu0 %vm100_vm0, %v2091_v22 }
 0x675   :  { %v2093_v26 = vpop.eup %2092 }
 0x676   :  { %v2095_v28 = vpop.eup %2094  ;;  %1831 = vmatprep.mubr.msk.f32.mxu0 %vm100_vm0, %v2093_v26  ;;  %v886_v62 = vsel %vm100_vm0, %v2093_v26, 0.0 }
 0x677   :  { %1832 = vmatmul.mubr.msk.f32.gmra.mrb[14].mxu0 %vm100_vm0, %v2095_v28 }
 0x678   :  { %1842 = vmatprep.mubr.msk.f32.mxu0 %vm214_vm1, %v1010_v35 }
 0x679   :  { %1949 = vmatpush3.bf16.xpose.msk.msra.mxu0 %vm2434_vm2, %v1944_v18 }
 0x67a   :  { %1952 = vmatprep.subr.msk.bf16.mxu0 %vm2434_vm2, %v1950_v39 }
 0x681   :  { %1955 = vmatpush3.bf16.xpose.msk.msra.mxu0 %vm2434_vm2, %v1950_v39 }
 0x688   :  { %1843 = vmatmul.mubr.msk.f32.vlgmr.msra.gmra.mrb[16].mxu0 %vm214_vm1, %v1012_v44 }
 0x689   :  { %1845 = vmatprep.mubr.msk.f32.mxu0 %vm214_vm1, %v1014_v45 }
 0x68c   :  { %1846 = vmatmul.mubr.msk.f32.gmra.mrb[18].mxu0 %vm214_vm1, %v1016_v46  ;;  %v343_v46 = vsel %vm100_vm0, %v2482_v7, 0.0 }
 0x746   :  { %v2600_v47 = vpop.f32.mrb[12].mxu0 }
 0x747   :  { %v2602_v48 = vpop.f32.mrb[13].mxu0 }
 0x74a   :  { %v2604_v49 = vpop.f32.mrb[14].mxu0 }
 0x74b   :  { %v2606_v50 = vpop.f32.mrb[15].mxu0 }
 0x75b   :  { %v1844_v51 = vpop.f32.mrb[16].mxu0 }
 0x75c   :  { %v1113_v24 = vadd.f32 %v1844_v51, %v2452_v30  ;;  %v1107_v52 = vpop.f32.mrb[17].mxu0 }
 0x75d   :  { %v1108_v53 = vadd.f32 %v1107_v52, %v2454_v32  ;;  %v610_v32 = vsel %vm100_vm0, %v2534_v2, 0.0  ;;  %v889_v2 = vsel %vm100_vm0, %v2095_v28, 0.0  ;;  %v340_v52 = vsel %vm100_vm0, %v2478_v1, 0.0 }
 0x75e   :  { %v1129_v54 = vsel %vm100_vm0, %v1113_v24, -inf }
 0x75f   :  { %1130 = vmax.xlane.f32.xlu1 %v1129_v54  ;;  %v1847_v55 = vpop.f32.mrb[18].mxu0  ;;  %v1126_v56 = vsel %vm100_vm0, %v1108_v53, -inf }
 0x760   :  { %v1123_v57 = vadd.f32 %v1847_v55, %v2461_v38  ;;  %v1117_v58 = vpop.f32.mrb[19].mxu0  ;;  %1127 = vmax.xlane.f32.xlu0 %v1126_v56  ;;  %v880_v38 = vsel %vm100_vm0, %v2089_v11, 0.0 }
 0x761   :  { %v1118_v60 = vadd.f32 %v1117_v58, %v2459_v37  ;;  %v613_v37 = vsel %vm100_vm0, %v2536_v3, 0.0 }
 0x762   :  { %v1135_v59 = vsel %vm100_vm0, %v1123_v57, -inf }
 0x763   :  { %v1132_v30 = vsel %vm100_vm0, %v1118_v60, -inf }
 0x764   :  { %1136 = vmax.xlane.f32.xlu0 %v1135_v59 }
 0x768   :  { %1133 = vmax.xlane.f32.xlu0 %v1132_v30 }
 0x770   :  { %2063 = vrot.lane.b32.xlu1 %v2420_v15, %s2282_s0  ;;  %v883_v15 = vsel %vm100_vm0, %v2091_v22, 0.0 }
 0x77e   :  { %2068 = vrot.lane.b32.xlu0 %v2429_v20, %s2282_s0  ;;  %v619_v20 = vsel %vm100_vm0, %v2550_v36, 0.0 }
 0x794   :  { %611 = vadd.xlane.f32.xlu1 %v610_v32 }
 0x798   :  { %881 = vadd.xlane.f32.xlu1 %v880_v38 }
 0x79c   :  { %617 = vadd.xlane.f32.xlu1 %v616_v61 }
 0x79d   :  { %614 = vadd.xlane.f32.xlu0 %v613_v37 }
 0x7a0   :  { %887 = vadd.xlane.f32.xlu1 %v886_v62 }
 0x7a1   :  { %884 = vadd.xlane.f32.xlu0 %v883_v15 }
 0x7a5   :  { %620 = vadd.xlane.f32.xlu0 %v619_v20 }
 0x7a9   :  { %890 = vadd.xlane.f32.xlu0 %v889_v2 }
 0x7ec   :  { %v1131_v63 = vpop.xlane.xlu1 %1130 }
 0x7ed   :  { %v1139_v27 = vsub.f32 %v1113_v24, %v1131_v63  ;;  %v1128_v0 = vpop.xlane.xlu0 %1127  ;;  %v349_v24 = vsel %vm100_vm0, %v2492_v13, 0.0 }
 0x7ee   :  { %v1138_v12 = vsub.f32 %v1108_v53, %v1128_v0  ;;  %v346_v53 = vsel %vm100_vm0, %v2484_v9, 0.0  ;;  %v1343_v0 = vld [vmem:[#allocation7 + $0x10] sm:$0xff] }
 0x7ef   :  { %v1144_v4 = vmul.f32 1.442695, %v1139_v27  ;;  %v1341_v27 = vld [vmem:[#allocation7] sm:$0xff] }
 0x7f0   :  { %v1142_v3 = vmul.f32 1.442695, %v1138_v12  ;;  %v2064_v17 = vpop.permute.xlu1 %2063  ;;  %v1344_v12 = vld [vmem:[#allocation7 + $0x18] sm:$0xff] }
 0x7f1   :  { %2096 = vpow2.f32 %v1144_v4  ;;  %v2066_v5 = vunpack.i.h.bf16 %v2064_v17  ;;  %v2065_v6 = vunpack.i.l.bf16 %v2064_v17  ;;  %v1137_v8 = vpop.xlane.xlu0 %1136  ;;  %v1968_v4 = vpack.c.bf16 %v1344_v12, %v1343_v0 }
 0x7f2   :  { %2098 = vpow2.f32 %v1142_v3  ;;  %v1141_v14 = vsub.f32 %v1123_v57, %v1137_v8 }
 0x7f3   :  { %v1956_v19 = vpack.c.bf16 %v2066_v5, %v2065_v6 }
 0x7f4   :  { %v1148_v10 = vmul.f32 1.442695, %v1141_v14 }
 0x7f5   :  { %1957 = vmatprep.subr.bf16.mxu1 %v1956_v19  ;;  %v1134_v36 = vpop.xlane.xlu0 %1133 }
 0x7f6   :  { %2100 = vpow2.f32 %v1148_v10  ;;  %v1140_v11 = vsub.f32 %v1118_v60, %v1134_v36  ;;  %1959 = vmatpush3.bf16.msra.mxu1 %v1956_v19 }
 0x7f8   :  { %v1146_v16 = vmul.f32 1.442695, %v1140_v11 }
 0x7f9   :  { %v2069_v18 = vpop.permute.xlu0 %2068 }
 0x7fa   :  { %2102 = vpow2.f32 %v1146_v16  ;;  %v2071_v21 = vunpack.i.h.bf16 %v2069_v18  ;;  %v2070_v22 = vunpack.i.l.bf16 %v2069_v18 }
 0x7fb   :  { %v2097_v23 = vpop.eup %2096 }
 0x7fc   :  { %v2099_v25 = vpop.eup %2098  ;;  %v1960_v26 = vpack.c.bf16 %v2071_v21, %v2070_v22  ;;  %v1153_v28 = vsel %vm100_vm0, %v2097_v23, 0.0 }
 0x7fd   :  { %1154 = vadd.xlane.f32.xlu0 %v1153_v28  ;;  %1856 = vmatprep.mubr.msk.f32.mxu1 %vm100_vm0, %v2099_v25  ;;  %v1150_v35 = vsel %vm100_vm0, %v2099_v25, 0.0 }
 0x7fe   :  { %1151 = vadd.xlane.f32.xlu1 %v1150_v35  ;;  %1961 = vmatprep.subr.bf16.mxu1 %v1960_v26 }
 0x7ff   :  { %1963 = vmatpush3.bf16.msra.mxu1 %v1960_v26 }
 0x800   :  { %v2101_v39 = vpop.eup %2100 }
 0x801   :  { %v1159_v44 = vsel %vm100_vm0, %v2101_v39, 0.0 }
 0x802   :  { %1160 = vadd.xlane.f32.xlu0 %v1159_v44  ;;  %1857 = vmatmul.mubr.msk.f32.vlgmr.msra.gmra.mrb[12].mxu1 %vm100_vm0, %v2097_v23 }
 0x804   :  { %v2103_v45 = vpop.eup %2102 }
 0x805   :  { %1859 = vmatprep.mubr.msk.f32.mxu1 %vm100_vm0, %v2103_v45  ;;  %v1156_v51 = vsel %vm100_vm0, %v2103_v45, 0.0 }
 0x806   :  { %344 = vadd.xlane.f32.xlu0 %v343_v46  ;;  %1157 = vadd.xlane.f32.xlu1 %v1156_v51 }
 0x807   :  { %1860 = vmatmul.mubr.msk.f32.gmra.mrb[14].mxu1 %vm100_vm0, %v2101_v39 }
 0x80a   :  { %350 = vadd.xlane.f32.xlu0 %v349_v24  ;;  %341 = vadd.xlane.f32.xlu1 %v340_v52 }
 0x80e   :  { %347 = vadd.xlane.f32.xlu1 %v346_v53 }
 0x821   :  { %v612_v54 = vpop.xlane.xlu1 %611 }
 0x822   :  { %2104 = vrcp.f32 %v612_v54 }
 0x825   :  { %v882_v7 = vpop.xlane.xlu1 %881 }
 0x826   :  { %2106 = vrcp.f32 %v882_v7 }
 0x829   :  { %v618_v55 = vpop.xlane.xlu1 %617 }
 0x82a   :  { %v615_v56 = vpop.xlane.xlu0 %614 }
 0x82b   :  { %2108 = vrcp.f32 %v615_v56 }
 0x82c   :  { %v2105_v57 = vpop.eup %2104  ;;  %2110 = vrcp.f32 %v618_v55 }
 0x82d   :  { %v735_v13 = vmul.f32 %v2105_v57, %v2562_v41  ;;  %v888_v58 = vpop.xlane.xlu1 %887 }
 0x82e   :  { %v885_v59 = vpop.xlane.xlu0 %884 }
 0x82f   :  { %2112 = vrcp.f32 %v885_v59  ;;  %1283 = vrot.lane.b32.xlu1 %v735_v13, %s2269_s18 }
 0x830   :  { %v2107_v1 = vpop.eup %2106  ;;  %2114 = vrcp.f32 %v888_v58 }
 0x831   :  { %v1005_v9 = vmul.f32 %v2107_v1, %v2602_v48 }
 0x832   :  { %v621_v60 = vpop.xlane.xlu0 %620 }
 0x833   :  { %2116 = vrcp.f32 %v621_v60  ;;  %1299 = vrot.lane.b32.xlu1 %v1005_v9, %s2283_s30 }
 0x835   :  { %v2109_v30 = vpop.eup %2108 }
 0x836   :  { %v891_v32 = vpop.xlane.xlu0 %890  ;;  %v736_v38 = vmul.f32 %v2109_v30, %v2560_v40  ;;  %v2111_v61 = vpop.eup %2110 }
 0x837   :  { %2118 = vrcp.f32 %v891_v32  ;;  %v737_v37 = vmul.f32 %v2111_v61, %v2566_v43  ;;  %v1342_v43 = vld [vmem:[#allocation7 + $0x8] sm:$0xff] }
 0x838   :  { %1285 = vrot.lane.b32.xlu0 %v736_v38, %s2269_s18 }
 0x839   :  { %v2113_v41 = vpop.eup %2112 }
 0x83a   :  { %v1006_v62 = vmul.f32 %v2113_v41, %v2600_v47  ;;  %v2115_v15 = vpop.eup %2114  ;;  %v1964_v47 = vpack.c.bf16 %v1342_v43, %v1341_v27  ;;  %v2145_v43 = vld [vmem:[#allocation2] sm:$0xff] }
 0x83b   :  { %v1007_v20 = vmul.f32 %v2115_v15, %v2606_v50 }
 0x83c   :  { %1287 = vrot.lane.b32.xlu0 %v737_v37, %s2269_s18  ;;  %1301 = vrot.lane.b32.xlu1 %v1006_v62, %s2283_s30 }
 0x83d   :  { %v2117_v48 = vpop.eup %2116  ;;  %1965 = vmatprep.subr.bf16.mxu1 %v1964_v47 }
 0x83e   :  { %v738_v2 = vmul.f32 %v2117_v48, %v2564_v42  ;;  %1967 = vmatpush3.bf16.msra.mxu1 %v1964_v47 }
 0x83f   :  { %1969 = vmatprep.subr.bf16.mxu1 %v1968_v4 }
 0x840   :  { %1303 = vrot.lane.b32.xlu0 %v1007_v20, %s2283_s30  ;;  %1289 = vrot.lane.b32.xlu1 %v738_v2, %s2269_s18 }
 0x841   :  { %v2119_v40 = vpop.eup %2118 }
 0x842   :  { %v1008_v63 = vmul.f32 %v2119_v40, %v2604_v49  ;;  %1971 = vmatpush3.bf16.msra.mxu1 %v1968_v4 }
 0x844   :  { %1305 = vrot.lane.b32.xlu1 %v1008_v63, %s2283_s30  ;;  %v2144_v63 = vld [vmem:[#allocation2 + $0x8] sm:$0xff] }
 0x88a   :  { %v1155_v50 = vpop.xlane.xlu0 %1154 }
 0x88b   :  { %v1152_v3 = vpop.xlane.xlu1 %1151  ;;  %2120 = vrcp.f32 %v1155_v50 }
 0x88c   :  { %2122 = vrcp.f32 %v1152_v3 }
 0x88f   :  { %v1161_v42 = vpop.xlane.xlu0 %1160 }
 0x890   :  { %2124 = vrcp.f32 %v1161_v42 }
 0x893   :  { %v1158_v17 = vpop.xlane.xlu1 %1157  ;;  %v345_v26 = vpop.xlane.xlu0 %344 }
 0x894   :  { %2126 = vrcp.f32 %v1158_v17 }
 0x895   :  { %v2121_v49 = vpop.eup %2120 }
 0x896   :  { %v2123_v6 = vpop.eup %2122 }
 0x897   :  { %v342_v22 = vpop.xlane.xlu1 %341  ;;  %v351_v35 = vpop.xlane.xlu0 %350 }
 0x898   :  { %2128 = vrcp.f32 %v342_v22 }
 0x899   :  { %2130 = vrcp.f32 %v345_v26 }
 0x89a   :  { %v2125_v10 = vpop.eup %2124 }
 0x89b   :  { %v348_v23 = vpop.xlane.xlu1 %347 }
 0x89c   :  { %2132 = vrcp.f32 %v348_v23 }
 0x89d   :  { %2134 = vrcp.f32 %v351_v35 }
 0x89e   :  { %v2127_v11 = vpop.eup %2126 }
 0x8a1   :  { %v1284_v25 = vpop.permute.xlu1 %1283 }
 0x8a2   :  { %v2129_v46 = vpop.eup %2128 }
 0x8a3   :  { %v465_v24 = vmul.f32 %v2129_v46, %v2508_v31  ;;  %v2131_v52 = vpop.eup %2130 }
 0x8a4   :  { %v466_v55 = vmul.f32 %v2131_v52, %v2506_v29 }
 0x8a5   :  { %v1300_v28 = vpop.permute.xlu1 %1299  ;;  %v1327_v7 = vsel %vm214_vm1, %v465_v24, %v1284_v25 }
 0x8a6   :  { %v2133_v56 = vpop.eup %2132  ;;  %v1332_v58 = vsel %vm1331_vm3, %v1327_v7, %v1300_v28 }
 0x8a7   :  { %v2135_v13 = vpop.eup %2134  ;;  %v467_v60 = vmul.f32 %v2133_v56, %v2512_v34 }
 0x8a8   :  { %v468_v29 = vmul.f32 %v2135_v13, %v2510_v33  ;;  %v1651_v33 = vld [vmem:[%s2746_s4] ss:$0 sm:$0xff] }
 0x8aa   :  { %v1286_v44 = vpop.permute.xlu0 %1285 }
 0x8ab   :  { %v1328_v59 = vsel %vm214_vm1, %v466_v55, %v1286_v44 }
 0x8ae   :  { %v1302_v39 = vpop.permute.xlu1 %1301  ;;  %v1288_v51 = vpop.permute.xlu0 %1287 }
 0x8af   :  { %v1333_v9 = vsel %vm1331_vm3, %v1328_v59, %v1302_v39  ;;  %v1329_v32 = vsel %vm214_vm1, %v467_v60, %v1288_v51 }
 0x8b2   :  { %v1290_v45 = vpop.permute.xlu1 %1289  ;;  %v1304_v54 = vpop.permute.xlu0 %1303 }
 0x8b3   :  { %v1330_v61 = vsel %vm214_vm1, %v468_v29, %v1290_v45  ;;  %v1334_v41 = vsel %vm1331_vm3, %v1329_v32, %v1304_v54 }
 0x8b6   :  { %v1306_v53 = vpop.permute.xlu1 %1305 }
 0x8b7   :  { %v1335_v62 = vsel %vm1331_vm3, %v1330_v61, %v1306_v53 }
 0x8d5   :  { %v1858_v5 = vpop.f32.mrb[12].mxu1 }
 0x8d6   :  { %v1276_v8 = vmul.f32 %v2121_v49, %v1858_v5  ;;  %v1252_v14 = vpop.f32.mrb[13].mxu1 }
 0x8d7   :  { %v1275_v19 = vmul.f32 %v2123_v6, %v1252_v14  ;;  %v2146_v6 = vld [vmem:[#allocation2 + $0x10] sm:$0xff]  ;;  %v2147_v14 = vld [vmem:[#allocation2 + $0x18] sm:$0xff] }
 0x8d8   :  { %1317 = vrot.lane.b32.xlu1 %v1276_v8, %s2284_s22 }
 0x8d9   :  { %1315 = vrot.lane.b32.xlu0 %v1275_v19, %s2284_s22 }
 0x8da   :  { %v1861_v36 = vpop.f32.mrb[14].mxu1 }
 0x8db   :  { %v1278_v16 = vmul.f32 %v2125_v10, %v1861_v36  ;;  %v1262_v18 = vpop.f32.mrb[15].mxu1 }
 0x8dc   :  { %v1277_v21 = vmul.f32 %v2127_v11, %v1262_v18 }
 0x8dd   :  { %1321 = vrot.lane.b32.xlu1 %v1278_v16, %s2284_s22 }
 0x8de   :  { %1319 = vrot.lane.b32.xlu0 %v1277_v21, %s2284_s22 }
 0x94a   :  { %v1318_v57 = vpop.permute.xlu1 %1317 }
 0x94b   :  { %v1316_v1 = vpop.permute.xlu0 %1315  ;;  %v1338_v30 = vsel %vm1336_vm4, %v1333_v9, %v1318_v57 }
 0x94c   :  { %v1337_v31 = vsel %vm1336_vm4, %v1332_v58, %v1316_v1 }
 0x94d   :  { %1870 = vmatprep.mubr.msk.f32.mxu1 %vm100_vm0, %v1337_v31 }
 0x94e   :  { %1871 = vmatmul.mubr.msk.f32.vlgmr.msra.gmra.mrb[16].mxu1 %vm100_vm0, %v1338_v30 }
 0x94f   :  { %v1322_v38 = vpop.permute.xlu1 %1321 }
 0x950   :  { %v1320_v37 = vpop.permute.xlu0 %1319  ;;  %v1340_v15 = vsel %vm1336_vm4, %v1335_v62, %v1322_v38 }
 0x951   :  { %v1339_v34 = vsel %vm1336_vm4, %v1334_v41, %v1320_v37 }
 0x952   :  { %1873 = vmatprep.mubr.msk.f32.mxu1 %vm100_vm0, %v1339_v34 }
 0x953   :  { %1874 = vmatmul.mubr.msk.f32.gmra.mrb[18].mxu1 %vm100_vm0, %v1340_v15 }
 0xa21   :  { %v1872_v48 = vpop.f32.mrb[16].mxu1 }
 0xa22   :  { %v1436_v20 = vadd.f32 %v1872_v48, %v1651_v33  ;;  %v1430_v2 = vpop.f32.mrb[17].mxu1 }
 0xa23   :  { %v1431_v40 = vadd.f32 %v1651_v33, %v1430_v2 }
 0xa24   :  { %v2681_v27 = vadd.f32 %v2144_v63, %v1436_v20 }
 0xa25   :  { %v2683_v0 = vadd.f32 %v2145_v43, %v1431_v40 }
 0xa26   :  { %v1875_v47 = vpop.f32.mrb[18].mxu1  ;;  %v1456_v12 = vsel %vm100_vm0, %v2681_v27, 0.0  ;;  %v1490_v17 = vmul.f32 %v2681_v27, %v2681_v27 }
 0xa27   :  { %v1446_v4 = vadd.f32 %v1875_v47, %v1651_v33  ;;  %v1440_v50 = vpop.f32.mrb[19].mxu1  ;;  %1457 = vadd.xlane.f32.xlu1 %v1456_v12  ;;  %v1453_v3 = vsel %vm100_vm0, %v2683_v0, 0.0  ;;  %v1489_v42 = vmul.f32 %v2683_v0, %v2683_v0 }
 0xa28   :  { %v1441_v49 = vadd.f32 %v1651_v33, %v1440_v50  ;;  %1454 = vadd.xlane.f32.xlu0 %v1453_v3  ;;  %v1496_v10 = vsel %vm100_vm0, %v1490_v17, 0.0 }
 0xa29   :  { %v1493_v5 = vsel %vm100_vm0, %v1489_v42, 0.0  ;;  %v2696_v19 = vadd.f32 %v2147_v14, %v1446_v4 }
 0xa2a   :  { %v2694_v8 = vadd.f32 %v2146_v6, %v1441_v49 }
 0xa2b   :  { %1494 = vadd.xlane.f32.xlu1 %v1493_v5  ;;  %v1462_v16 = vsel %vm100_vm0, %v2696_v19, 0.0  ;;  %v1492_v21 = vmul.f32 %v2696_v19, %v2696_v19 }
 0xa2c   :  { %1497 = vadd.xlane.f32.xlu0 %v1496_v10  ;;  %v1491_v36 = vmul.f32 %v2694_v8, %v2694_v8  ;;  %v1459_v18 = vsel %vm100_vm0, %v2694_v8, 0.0 }
 0xa2d   :  { %v1502_v22 = vsel %vm100_vm0, %v1492_v21, 0.0 }
 0xa2e   :  { %v1499_v11 = vsel %vm100_vm0, %v1491_v36, 0.0 }
 0xa2f   :  { %1500 = vadd.xlane.f32.xlu1 %v1499_v11 }
 0xa30   :  { %1463 = vadd.xlane.f32.xlu0 %v1462_v16 }
 0xa34   :  { %1460 = vadd.xlane.f32.xlu0 %v1459_v18 }
 0xa38   :  { %1503 = vadd.xlane.f32.xlu0 %v1502_v22 }
 0xab4   :  { %v1458_v23 = vpop.xlane.xlu1 %1457 }
 0xab5   :  { %v1471_v25 = vrot.slane %v1458_v23, 4  ;;  %v1455_v26 = vpop.xlane.xlu0 %1454 }
 0xab6   :  { %v1465_v28 = vrot.slane %v1455_v26, 4 }
 0xab7   :  { %v1472_v35 = vadd.f32 %v1471_v25, %v1458_v23 }
 0xab8   :  { %v1466_v39 = vadd.f32 %v1465_v28, %v1455_v26  ;;  %v1495_v44 = vpop.xlane.xlu1 %1494 }
 0xab9   :  { %v1473_v45 = vrot.slane %v1472_v35, 2  ;;  %v1505_v46 = vrot.slane %v1495_v44, 4  ;;  %v1498_v51 = vpop.xlane.xlu0 %1497 }
 0xaba   :  { %v1467_v24 = vrot.slane %v1466_v39, 2  ;;  %v1511_v52 = vrot.slane %v1498_v51, 4 }
 0xabb   :  { %v1474_v53 = vadd.f32 %v1473_v45, %v1472_v35  ;;  %v1506_v54 = vadd.f32 %v1505_v46, %v1495_v44 }
 0xabc   :  { %v1468_v7 = vadd.f32 %v1467_v24, %v1466_v39  ;;  %v1512_v55 = vadd.f32 %v1511_v52, %v1498_v51  ;;  %v1501_v56 = vpop.xlane.xlu1 %1500 }
 0xabd   :  { %v1475_v57 = vrot.slane %v1474_v53, 1  ;;  %v1507_v13 = vrot.slane %v1506_v54, 2  ;;  %v1517_v58 = vrot.slane %v1501_v56, 4  ;;  %v1464_v59 = vpop.xlane.xlu0 %1463 }
 0xabe   :  { %v1469_v1 = vrot.slane %v1468_v7, 1  ;;  %v1513_v9 = vrot.slane %v1512_v55, 2  ;;  %v1483_v31 = vrot.slane %v1464_v59, 4 }
 0xabf   :  { %v1476_v60 = vadd.f32 %v1475_v57, %v1474_v53  ;;  %v1508_v30 = vadd.f32 %v1507_v13, %v1506_v54  ;;  %v1518_v29 = vadd.f32 %v1517_v58, %v1501_v56  ;;  %v1553_v57 = vld [vmem:[%s2747_s5] sm:$0xff]  ;;  %s2285_s5 = smov [#allocation10]  }
 0xac0   :  { %v1470_v32 = vadd.f32 %v1469_v1, %v1468_v7  ;;  %v1514_v38 = vadd.f32 %v1513_v9, %v1512_v55  ;;  %v1484_v61 = vadd.f32 %v1483_v31, %v1464_v59  ;;  %v1554_v9 = vld [vmem:[%s2748_s6] sm:$0xff]  ;;  %s1584_s6 = sshll.u32 %s2285_s5, 4  ;;  %s1585_s6 = int_to_ptr.vmem [resolvable:$true] %s1584_s6 }
 0xac1   :  { %v1530_v41 = vmul.f32 0.00390625, %v1476_v60  ;;  %v1509_v37 = vrot.slane %v1508_v30, 1  ;;  %v1519_v62 = vrot.slane %v1518_v29, 2  ;;  %v1461_v34 = vpop.xlane.xlu0 %1460  ;;  %s2236_s29 = scalar_lea.vmem %s1585_s6, 512  ;;  %p2241_p5 = scmp.lt.s32.totalorder %s1585_s6, %s1585_s6 }
 0xac2   :  { %v1529_v15 = vmul.f32 0.00390625, %v1470_v32  ;;  %v1515_v33 = vrot.slane %v1514_v38, 1  ;;  %v1485_v48 = vrot.slane %v1484_v61, 2  ;;  %v1477_v20 = vrot.slane %v1461_v34, 4  ;;  %p2237_p4 = scmp.ne.s32.totalorder %s1585_s6, %s2236_s29  ;;  %p2242_p6 = scmp.lt.s32.totalorder %s2236_s29, %s2236_s29 }
 0xac3   :  { %v1510_v2 = vadd.f32 %v1509_v37, %v1508_v30  ;;  %v1520_v12 = vadd.f32 %v1519_v62, %v1518_v29  ;;  %v1538_v3 = vmul.f32 %v1530_v41, %v1530_v41  ;;  %v1556_v56 = vsub.f32 %v2681_v27, %v1530_v41 }
 0xac4   :  { %v1537_v40 = vmul.f32 %v1529_v15, %v1529_v15  ;;  %v1516_v63 = vadd.f32 %v1515_v33, %v1514_v38  ;;  %v1486_v43 = vadd.f32 %v1485_v48, %v1484_v61  ;;  %v1478_v4 = vadd.f32 %v1477_v20, %v1461_v34  ;;  %p2243_p7 = por %p2242_p6, %p2241_p5 }
 0xac5   :  { %v1533_v47 = vmul.f32 0.00390625, %v1510_v2  ;;  %v1504_v50 = vpop.xlane.xlu0 %1503  ;;  %v1521_v11 = vrot.slane %v1520_v12, 1  ;;  %v1555_v54 = vsub.f32 %v2683_v0, %v1529_v15 }
 0xac6   :  { %v1534_v42 = vmul.f32 0.00390625, %v1516_v63  ;;  %v1487_v17 = vrot.slane %v1486_v43, 1  ;;  %v1523_v49 = vrot.slane %v1504_v50, 4  ;;  %v1479_v6 = vrot.slane %v1478_v4, 2  ;;  %p2244_p8 = pnand %p2243_p7, %p2237_p4 }
 0xac7   :  { %v1541_v5 = vsub.f32 %v1533_v47, %v1537_v40  ;;  %v1522_v26 = vadd.f32 %v1521_v11, %v1520_v12 }
 0xac8   :  { %v1542_v14 = vsub.f32 %v1534_v42, %v1538_v3  ;;  %v1524_v10 = vadd.f32 %v1523_v49, %v1504_v50  ;;  %v1480_v16 = vadd.f32 %v1479_v6, %v1478_v4  ;;  %v1488_v21 = vadd.f32 %v1487_v17, %v1486_v43 }
 0xac9   :  { %v1545_v36 = vadd.f32 1e-06, %v1541_v5  ;;  %v1535_v46 = vmul.f32 0.00390625, %v1522_v26 }
 0xaca   :  { %v1546_v18 = vadd.f32 1e-06, %v1542_v14  ;;  %v1525_v22 = vrot.slane %v1524_v10, 2  ;;  %v1481_v23 = vrot.slane %v1480_v16, 1  ;;  %v1532_v35 = vmul.f32 0.00390625, %v1488_v21 }
 0xacb   :  { %2136 = vrsqrt.f32 %v1545_v36 }
 0xacc   :  { %2138 = vrsqrt.f32 %v1546_v18  ;;  %v1526_v25 = vadd.f32 %v1525_v22, %v1524_v10  ;;  %v1482_v28 = vadd.f32 %v1481_v23, %v1480_v16  ;;  %v1540_v24 = vmul.f32 %v1532_v35, %v1532_v35 }
 0xacd   :  { %v1558_v62 = vsub.f32 %v2696_v19, %v1532_v35 }
 0xace   :  { %v1527_v39 = vrot.slane %v1526_v25, 1  ;;  %v1531_v44 = vmul.f32 0.00390625, %v1482_v28 }
 0xad0   :  { %v1528_v45 = vadd.f32 %v1527_v39, %v1526_v25  ;;  %v1539_v51 = vmul.f32 %v1531_v44, %v1531_v44  ;;  %v1557_v41 = vsub.f32 %v2694_v8, %v1531_v44 }
 0xad2   :  { %v1536_v52 = vmul.f32 0.00390625, %v1528_v45  ;;  %v1543_v53 = vsub.f32 %v1535_v46, %v1539_v51 }
 0xad4   :  { %v1544_v7 = vsub.f32 %v1536_v52, %v1540_v24  ;;  %v1547_v13 = vadd.f32 1e-06, %v1543_v53 }
 0xad5   :  { %v2137_v55 = vpop.eup %2136 }
 0xad6   :  { %v2139_v58 = vpop.eup %2138  ;;  %v1548_v59 = vadd.f32 1e-06, %v1544_v7  ;;  %v1559_v1 = vmul.f32 %v2137_v55, %v1555_v54  ;;  %2140 = vrsqrt.f32 %v1547_v13 }
 0xad7   :  { %v1560_v31 = vmul.f32 %v2139_v58, %v1556_v56 }
 0xad8   :  { %2142 = vrsqrt.f32 %v1548_v59  ;;  %v1563_v60 = vmul.f32 %v1559_v1, %v1553_v57 }
 0xad9   :  { %v1564_v30 = vmul.f32 %v1560_v31, %v1553_v57 }
 0xada   :  { %v1567_v29 = vadd.f32 %v1563_v60, %v1554_v9 }
 0xadb   :  { %v1568_v32 = vadd.f32 %v1564_v30, %v1554_v9 }
 0xadc   :  { %v1571_v38 = vadd.f32 %v1567_v29, %v2683_v0 }
 0xadd   :  { %v1572_v61 = vadd.f32 %v1568_v32, %v2681_v27 }
 0xade   :  { %1575 = vst.msk [vmem:[#allocation10] sm:$0xff] %vm100_vm0, %v1571_v38 }
 0xadf   :  { %1576 = vst.msk [vmem:[#allocation10 + $0x8] sm:$0xff] %vm100_vm0, %v1572_v61 }
 0xae0   :  { %v2141_v37 = vpop.eup %2140 }
 0xae1   :  { %v1561_v15 = vmul.f32 %v2141_v37, %v1557_v41 }
 0xae2   :  { %v2143_v34 = vpop.eup %2142 }
 0xae3   :  { %v1562_v33 = vmul.f32 %v2143_v34, %v1558_v62  ;;  %v1565_v48 = vmul.f32 %v1561_v15, %v1553_v57 }
 0xae5   :  { %v1566_v20 = vmul.f32 %v1562_v33, %v1553_v57  ;;  %v1569_v2 = vadd.f32 %v1565_v48, %v1554_v9 }
 0xae7   :  { %v1570_v0 = vadd.f32 %v1566_v20, %v1554_v9  ;;  %v1573_v27 = vadd.f32 %v1569_v2, %v2694_v8 }
 0xae9   :  { %v1574_v40 = vadd.f32 %v1570_v0, %v2696_v19  ;;  %1577 = vst.msk [vmem:[#allocation10 + $0x10] sm:$0xff] %vm100_vm0, %v1573_v27 }
 0xaeb   :  { %1578 = vst.msk [vmem:[#allocation10 + $0x18] sm:$0xff] %vm100_vm0, %v1574_v40 }
 0xaec   :  { %2247 = shalt.err (!%p2244_p8)
}
 0xaed   :  { %s2248_s3 = scalar_lea.hbm %s2750_s8, 512 }
 0xaee   :  { %p2249_p9 = scmp.ne.s32.totalorder %s2750_s8, %s2248_s3  ;;  %p2252_p10 = scmp.lt.u32.totalorder %s2248_s3, %s2750_s8 }
 0xaf0   :  { %p2254_p11 = pnand %p2252_p10, %p2249_p9 }
 0xaf2   :  { %2257 = shalt.err (!%p2254_p11)
}
 0xaf3   :  { %1590 = dma.vmem_to_hbm [thread:$0]  %s1585_s6, 512, %s2750_s8, [#allocation4], %s2268_s17, %s2268_s17, %s2269_s18  }
 0xaf4   :  { %2264 = dma.done.wait [#allocation4], 512  }
 0xaf5   :  { %2265 = vsyncadd [#allocation4], 4294966784 }
 0xaf6   :  { %1594 = vsyncpa [#allocation3], 1 }
 0xaf7   :  { %1595 = vsyncpa [#allocation6], 1 }
 0xaf8   :  { %1596 = vsyncpa [#allocation9], 1 }
 0xaf9   :  { %1597 = vsyncpa [#allocation4], 1 }

</bundles_post_ra>
